<compile_context>
chip_gen: v6e
topology: v6e:2x2x1
jax: 0.10.0
libtpu: 0.0.40
codegen_flags: <defaults>
</compile_context>

<pallas_src>
import functools

import numpy as np
import jax
import jax.numpy as jnp
from jax.experimental import pallas as pl
from jax.experimental.pallas import tpu as pltpu

B = 2                      # batch
H = W = 28                 # input spatial (required so fc1 sees 8*13*13)
C_OUT = 8                  # conv output channels
K = 3                      # conv kernel size
CH, CW = H - K + 1, W - K + 1     # 26, 26  conv output
PH, PW = CH // 2, CW // 2         # 13, 13  pooled output
SLAB = C_OUT * CW                 # 208     lane-dense conv slab width
QC = C_OUT * PW                   # 104     pooled slab width
COLS = 10 * PH                    # 130     folded-FC intermediate width
FC_IN = C_OUT * PH * PW           # 1352
FC_OUT = 10


# ---------------------------------------------------------------------------
# Fused kernel: conv + bias + ReLU + 2x2 max-pool + (folded) fc + ReLU
# + log_softmax for one batch block of TB images.
# ---------------------------------------------------------------------------
def fused_net_kernel(x_ref, shift_ref, wband_ref, bcol_ref, rpool_ref,
                     cpool_ref, wq_ref, dmask_ref, rb_ref, gc_ref, bfc_ref,
                     out_ref):
    x2d = x_ref[0]                                         # (TB*28, 28) f32

    # ---- conv1: banded-weight MXU matmuls; slab y[b*26+i, c*26+j] ---------
    acc = None
    for ki in range(K):
        xs = jnp.dot(shift_ref[ki], x2d,
                     preferred_element_type=jnp.float32)   # (TB*26, 28)
        term = jnp.dot(xs, wband_ref[ki],
                       preferred_element_type=jnp.float32)  # (TB*26, 208)
        acc = term if acc is None else acc + term
    y = jnp.maximum(acc + bcol_ref[...], 0.0)              # bias + ReLU

    # ---- 2x2 max pool: precomputed 0/1 selector matmuls + elementwise max -
    rows = jnp.maximum(
        jnp.dot(rpool_ref[0], y, preferred_element_type=jnp.float32),
        jnp.dot(rpool_ref[1], y, preferred_element_type=jnp.float32))
    pooled = jnp.maximum(
        jnp.dot(rows, cpool_ref[0], preferred_element_type=jnp.float32),
        jnp.dot(rows, cpool_ref[1], preferred_element_type=jnp.float32))
    # pooled[b*13+pi, c*13+pj]                              (TB*13, 104)

    # ---- fc1 with the flatten folded into the repacked weight -------------
    p = jnp.dot(pooled, wq_ref[...],
                preferred_element_type=jnp.float32)         # (TB*13, 130)
    zrow = jnp.dot(rb_ref[...], p * dmask_ref[...],
                   preferred_element_type=jnp.float32)      # (TB, 130)
    z = jnp.dot(zrow, gc_ref[...],
                preferred_element_type=jnp.float32) + bfc_ref[...]  # (TB, 10)
    z = jnp.maximum(z, 0.0)                                 # ReLU

    # ---- log_softmax over classes -----------------------------------------
    zmax = jnp.max(z, axis=1, keepdims=True)
    lse = jnp.log(jnp.sum(jnp.exp(z - zmax), axis=1, keepdims=True)) + zmax
    out_ref[0] = z - lse


# ---------------------------------------------------------------------------
# One-time host-side packing (hoisted out of the forward pass).
# ---------------------------------------------------------------------------
def pack_weights(conv_w, conv_b, fc_w, fc_b):
    cw = np.asarray(conv_w, dtype=np.float32)        # (8, 1, 3, 3)
    cb = np.asarray(conv_b, dtype=np.float32)        # (8,)
    fw = np.asarray(fc_w, dtype=np.float32)          # (10, 1352)
    fb = np.asarray(fc_b, dtype=np.float32)          # (10,)

    # banded conv weight: wband[ki, kj + j, c*26 + j] = conv_w[c, 0, ki, kj]
    wband = np.zeros((K, W, SLAB), np.float32)
    j = np.arange(CW)
    for ki in range(K):
        for kj in range(K):
            for c in range(C_OUT):
                wband[ki, kj + j, c * CW + j] = cw[c, 0, ki, kj]

    bcol = np.repeat(cb, CW)[None, :]                # (1, 208), bcol[0,c*26+j]=b[c]

    # FC weight repacked so the flatten never materializes:
    #   wq[c*13 + pj, o*13 + pi] = fc_w[o, c*169 + pi*13 + pj]
    fw4 = fw.reshape(FC_OUT, C_OUT, PH, PW)          # [o, c, pi, pj]
    wq = np.transpose(fw4, (1, 3, 0, 2)).reshape(C_OUT * PW, FC_OUT * PH)
    bfc = fb[None, :]                                # (1, 10)
    return wband, bcol, np.ascontiguousarray(wq, np.float32), bfc


def pack_constants(tb):
    """Structural 0/1 matrices for a batch block of `tb` images."""
    # per-image row-shift selectors for the conv: shift[ki] @ X picks rows ki..ki+25
    shift = np.zeros((K, tb * CH, tb * H), np.float32)
    rpool = np.zeros((2, tb * PH, tb * CH), np.float32)
    for b in range(tb):
        for i in range(CH):
            for ki in range(K):
                shift[ki, b * CH + i, b * H + ki + i] = 1.0
        for pi in range(PH):
            rpool[0, b * PH + pi, b * CH + 2 * pi] = 1.0
            rpool[1, b * PH + pi, b * CH + 2 * pi + 1] = 1.0

    # column pool selectors (batch independent): pick even / odd columns per channel
    cpool = np.zeros((2, SLAB, QC), np.float32)
    for c in range(C_OUT):
        for pj in range(PW):
            cpool[0, c * CW + 2 * pj, c * PW + pj] = 1.0
            cpool[1, c * CW + 2 * pj + 1, c * PW + pj] = 1.0

    # diagonal mask keeping P[b*13+pi, o*13+pi]
    dmask = np.zeros((tb * PH, COLS), np.float32)
    for b in range(tb):
        for pi in range(PH):
            for o in range(FC_OUT):
                dmask[b * PH + pi, o * PH + pi] = 1.0

    # per-image row collapse and per-class column collapse
    rb = np.zeros((tb, tb * PH), np.float32)
    for b in range(tb):
        rb[b, b * PH:(b + 1) * PH] = 1.0
    gc = np.zeros((COLS, FC_OUT), np.float32)
    for o in range(FC_OUT):
        gc[o * PH:(o + 1) * PH, o] = 1.0

    return shift, rpool, cpool, dmask, rb, gc


# ---------------------------------------------------------------------------
# Forward pass.  The number of grid blocks is derived from the packed
# constants: tb images per step, batch // tb steps (1 step on v5e/v6e,
# 2 "parallel" steps to feed both v7x TensorCores).
# ---------------------------------------------------------------------------
@jax.jit
def net_forward(x, params):
    wband, bcol, wq, bfc, shift, rpool, cpool, dmask, rb, gc = params
    batch = x.shape[0]
    tb = shift.shape[1] // CH
    grid_blocks = batch // tb
    x3 = x.astype(jnp.float32).reshape(grid_blocks, tb * H, W)

    const2 = lambda g: (0, 0)
    const3 = lambda g: (0, 0, 0)
    out = pl.pallas_call(
        fused_net_kernel,
        out_shape=jax.ShapeDtypeStruct((grid_blocks, tb, FC_OUT), jnp.float32),
        grid=(grid_blocks,),
        in_specs=[
            pl.BlockSpec((1, tb * H, W), lambda g: (g, 0, 0)),  # batch block
            pl.BlockSpec(shift.shape, const3),                  # resident consts
            pl.BlockSpec(wband.shape, const3),
            pl.BlockSpec(bcol.shape, const2),
            pl.BlockSpec(rpool.shape, const3),
            pl.BlockSpec(cpool.shape, const3),
            pl.BlockSpec(wq.shape, const2),
            pl.BlockSpec(dmask.shape, const2),
            pl.BlockSpec(rb.shape, const2),
            pl.BlockSpec(gc.shape, const2),
            pl.BlockSpec(bfc.shape, const2),
        ],
        out_specs=pl.BlockSpec((1, tb, FC_OUT), lambda g: (g, 0, 0)),
        compiler_params=pltpu.CompilerParams(
            dimension_semantics=("parallel",)),   # v7x: blocks across TensorCores
    )(x3, shift, wband, bcol, rpool, cpool, wq, dmask, rb, gc, bfc)
    return out.reshape(batch, FC_OUT)


# ---------------------------------------------------------------------------
# Pure-JAX reference for verification.
# ---------------------------------------------------------------------------
def net_forward_ref(x, conv_w, conv_b, fc_w, fc_b):
    conv = jax.lax.conv_general_dilated(
        x, conv_w, window_strides=(1, 1), padding="VALID",
        dimension_numbers=("NCHW", "OIHW", "NCHW"),
        precision=jax.lax.Precision.HIGHEST) + conv_b[None, :, None, None]
    y = jax.nn.relu(conv)                                   # (B, 8, 26, 26)
    pooled = y.reshape(x.shape[0], C_OUT, PH, 2, PW, 2).max(axis=(3, 5))
    flat = pooled.reshape(x.shape[0], FC_IN)                # torch.flatten(x, 1)
    z = jax.nn.relu(jnp.dot(flat, fc_w.T,
                            precision=jax.lax.Precision.HIGHEST) + fc_b)
    return jax.nn.log_softmax(z, axis=1)


if __name__ == "__main__":
    key = jax.random.PRNGKey(0)
    kx, kw1, kb1, kw2, kb2 = jax.random.split(key, 5)

    # deterministic synthetic parameters (shapes from Net.__init__)
    conv_w = 0.1 * jax.random.normal(kw1, (C_OUT, 1, K, K), jnp.float32)
    conv_b = 0.1 * jax.random.normal(kb1, (C_OUT,), jnp.float32)
    fc_w = 0.05 * jax.random.normal(kw2, (FC_OUT, FC_IN), jnp.float32)
    fc_b = 0.05 * jax.random.normal(kb2, (FC_OUT,), jnp.float32)

    # deterministic input, NCHW (B, 1, 28, 28)
    x = jax.random.normal(kx, (B, 1, H, W), jnp.float32)

    weights = pack_weights(conv_w, conv_b, fc_w, fc_b)
    ref = net_forward_ref(x, conv_w, conv_b, fc_w, fc_b)

    # v5e/v6e config: whole batch in one grid step (single TensorCore).
    consts_full = pack_constants(B)
    out1 = jax.block_until_ready(net_forward(x, weights + consts_full))
    assert out1.shape == (B, FC_OUT)
    assert jnp.allclose(out1, ref, atol=2e-2, rtol=2e-2), (out1, ref)

    # v7x config: 2 parallel grid blocks of B//2 images (one per TensorCore).
    consts_half = pack_constants(B // 2)
    out2 = jax.block_until_ready(net_forward(x, weights + consts_half))
    assert out2.shape == (B, FC_OUT)
    assert jnp.allclose(out2, ref, atol=2e-2, rtol=2e-2), (out2, ref)

    print("KERNEL_OK")
</pallas_src>

<mosaic_0001>
module attributes {stable_mosaic.version = 11 : i64} {
  func.func @fused_net_kernel(%arg0: i32, %arg1: memref<1x56x28xf32, #tpu.memory_space<vmem>>, %arg2: memref<3x52x56xf32, #tpu.memory_space<vmem>>, %arg3: memref<3x28x208xf32, #tpu.memory_space<vmem>>, %arg4: memref<1x208xf32, #tpu.memory_space<vmem>>, %arg5: memref<2x26x52xf32, #tpu.memory_space<vmem>>, %arg6: memref<2x208x104xf32, #tpu.memory_space<vmem>>, %arg7: memref<104x130xf32, #tpu.memory_space<vmem>>, %arg8: memref<26x130xf32, #tpu.memory_space<vmem>>, %arg9: memref<2x26xf32, #tpu.memory_space<vmem>>, %arg10: memref<130x10xf32, #tpu.memory_space<vmem>>, %arg11: memref<1x10xf32, #tpu.memory_space<vmem>>, %arg12: memref<1x2x10xf32, #tpu.memory_space<vmem>>) attributes {dimension_semantics = [#tpu.dimension_semantics<parallel>], iteration_bounds = array<i64: 1>, scalar_prefetch = 0 : i64, scratch_operands = 0 : i64, tpu.core_type = #tpu.core_type<tc>, window_params = [{transform_indices = @transform_0, window_bounds = array<i64: 1, 56, 28>}, {pipeline_mode = #tpu.pipeline_mode<synchronous>, transform_indices = @transform_1, window_bounds = array<i64: 3, 52, 56>}, {pipeline_mode = #tpu.pipeline_mode<synchronous>, transform_indices = @transform_2, window_bounds = array<i64: 3, 28, 208>}, {pipeline_mode = #tpu.pipeline_mode<synchronous>, transform_indices = @transform_3, window_bounds = array<i64: 1, 208>}, {pipeline_mode = #tpu.pipeline_mode<synchronous>, transform_indices = @transform_4, window_bounds = array<i64: 2, 26, 52>}, {pipeline_mode = #tpu.pipeline_mode<synchronous>, transform_indices = @transform_5, window_bounds = array<i64: 2, 208, 104>}, {pipeline_mode = #tpu.pipeline_mode<synchronous>, transform_indices = @transform_6, window_bounds = array<i64: 104, 130>}, {pipeline_mode = #tpu.pipeline_mode<synchronous>, transform_indices = @transform_7, window_bounds = array<i64: 26, 130>}, {pipeline_mode = #tpu.pipeline_mode<synchronous>, transform_indices = @transform_8, window_bounds = array<i64: 2, 26>}, {pipeline_mode = #tpu.pipeline_mode<synchronous>, transform_indices = @transform_9, window_bounds = array<i64: 130, 10>}, {pipeline_mode = #tpu.pipeline_mode<synchronous>, transform_indices = @transform_10, window_bounds = array<i64: 1, 10>}, {transform_indices = @transform_11, window_bounds = array<i64: 1, 2, 10>}]} {
    %c0 = arith.constant 0 : index
    %c0_0 = arith.constant 0 : index
    %c0_1 = arith.constant 0 : index
    %0 = vector.load %arg1[%c0, %c0_0, %c0_1] : memref<1x56x28xf32, #tpu.memory_space<vmem>>, vector<1x56x28xf32>
    %1 = vector.shape_cast %0 : vector<1x56x28xf32> to vector<56x28xf32>
    %c0_2 = arith.constant 0 : index
    %c0_3 = arith.constant 0 : index
    %c0_4 = arith.constant 0 : index
    %2 = vector.load %arg2[%c0_2, %c0_3, %c0_4] : memref<3x52x56xf32, #tpu.memory_space<vmem>>, vector<1x52x56xf32>
    %3 = vector.shape_cast %2 : vector<1x52x56xf32> to vector<52x56xf32>
    %cst = arith.constant dense<0.000000e+00> : vector<52x28xf32>
    %4 = tpu.matmul %3, %1, %cst {dimension_numbers = #tpu.dot_dimension_numbers<[1], [0], [0], [1], [0, 0, 1, 1], [], []>} : vector<52x56xf32>, vector<56x28xf32>, vector<52x28xf32> -> vector<52x28xf32>
    %c0_5 = arith.constant 0 : index
    %c0_6 = arith.constant 0 : index
    %c0_7 = arith.constant 0 : index
    %5 = vector.load %arg3[%c0_5, %c0_6, %c0_7] : memref<3x28x208xf32, #tpu.memory_space<vmem>>, vector<1x28x208xf32>
    %6 = vector.shape_cast %5 : vector<1x28x208xf32> to vector<28x208xf32>
    %cst_8 = arith.constant dense<0.000000e+00> : vector<52x208xf32>
    %7 = tpu.matmul %4, %6, %cst_8 {dimension_numbers = #tpu.dot_dimension_numbers<[1], [0], [0], [1], [0, 0, 1, 1], [], []>} : vector<52x28xf32>, vector<28x208xf32>, vector<52x208xf32> -> vector<52x208xf32>
    %c1 = arith.constant 1 : index
    %c0_9 = arith.constant 0 : index
    %c0_10 = arith.constant 0 : index
    %8 = vector.load %arg2[%c1, %c0_9, %c0_10] : memref<3x52x56xf32, #tpu.memory_space<vmem>>, vector<1x52x56xf32>
    %9 = vector.shape_cast %8 : vector<1x52x56xf32> to vector<52x56xf32>
    %cst_11 = arith.constant dense<0.000000e+00> : vector<52x28xf32>
    %10 = tpu.matmul %9, %1, %cst_11 {dimension_numbers = #tpu.dot_dimension_numbers<[1], [0], [0], [1], [0, 0, 1, 1], [], []>} : vector<52x56xf32>, vector<56x28xf32>, vector<52x28xf32> -> vector<52x28xf32>
    %c1_12 = arith.constant 1 : index
    %c0_13 = arith.constant 0 : index
    %c0_14 = arith.constant 0 : index
    %11 = vector.load %arg3[%c1_12, %c0_13, %c0_14] : memref<3x28x208xf32, #tpu.memory_space<vmem>>, vector<1x28x208xf32>
    %12 = vector.shape_cast %11 : vector<1x28x208xf32> to vector<28x208xf32>
    %cst_15 = arith.constant dense<0.000000e+00> : vector<52x208xf32>
    %13 = tpu.matmul %10, %12, %cst_15 {dimension_numbers = #tpu.dot_dimension_numbers<[1], [0], [0], [1], [0, 0, 1, 1], [], []>} : vector<52x28xf32>, vector<28x208xf32>, vector<52x208xf32> -> vector<52x208xf32>
    %14 = arith.addf %7, %13 : vector<52x208xf32>
    %c2 = arith.constant 2 : index
    %c0_16 = arith.constant 0 : index
    %c0_17 = arith.constant 0 : index
    %15 = vector.load %arg2[%c2, %c0_16, %c0_17] : memref<3x52x56xf32, #tpu.memory_space<vmem>>, vector<1x52x56xf32>
    %16 = vector.shape_cast %15 : vector<1x52x56xf32> to vector<52x56xf32>
    %cst_18 = arith.constant dense<0.000000e+00> : vector<52x28xf32>
    %17 = tpu.matmul %16, %1, %cst_18 {dimension_numbers = #tpu.dot_dimension_numbers<[1], [0], [0], [1], [0, 0, 1, 1], [], []>} : vector<52x56xf32>, vector<56x28xf32>, vector<52x28xf32> -> vector<52x28xf32>
    %c2_19 = arith.constant 2 : index
    %c0_20 = arith.constant 0 : index
    %c0_21 = arith.constant 0 : index
    %18 = vector.load %arg3[%c2_19, %c0_20, %c0_21] : memref<3x28x208xf32, #tpu.memory_space<vmem>>, vector<1x28x208xf32>
    %19 = vector.shape_cast %18 : vector<1x28x208xf32> to vector<28x208xf32>
    %cst_22 = arith.constant dense<0.000000e+00> : vector<52x208xf32>
    %20 = tpu.matmul %17, %19, %cst_22 {dimension_numbers = #tpu.dot_dimension_numbers<[1], [0], [0], [1], [0, 0, 1, 1], [], []>} : vector<52x28xf32>, vector<28x208xf32>, vector<52x208xf32> -> vector<52x208xf32>
    %21 = arith.addf %14, %20 : vector<52x208xf32>
    %c0_23 = arith.constant 0 : index
    %c0_24 = arith.constant 0 : index
    %22 = vector.load %arg4[%c0_23, %c0_24] : memref<1x208xf32, #tpu.memory_space<vmem>>, vector<1x208xf32>
    %23 = vector.broadcast %22 : vector<1x208xf32> to vector<52x208xf32>
    %24 = arith.addf %21, %23 : vector<52x208xf32>
    %cst_25 = arith.constant 0.000000e+00 : f32
    %25 = vector.broadcast %cst_25 : f32 to vector<52x208xf32>
    %26 = arith.maximumf %24, %25 : vector<52x208xf32>
    %c0_26 = arith.constant 0 : index
    %c0_27 = arith.constant 0 : index
    %c0_28 = arith.constant 0 : index
    %27 = vector.load %arg5[%c0_26, %c0_27, %c0_28] : memref<2x26x52xf32, #tpu.memory_space<vmem>>, vector<1x26x52xf32>
    %28 = vector.shape_cast %27 : vector<1x26x52xf32> to vector<26x52xf32>
    %cst_29 = arith.constant dense<0.000000e+00> : vector<26x208xf32>
    %29 = tpu.matmul %28, %26, %cst_29 {dimension_numbers = #tpu.dot_dimension_numbers<[1], [0], [0], [1], [0, 0, 1, 1], [], []>} : vector<26x52xf32>, vector<52x208xf32>, vector<26x208xf32> -> vector<26x208xf32>
    %c1_30 = arith.constant 1 : index
    %c0_31 = arith.constant 0 : index
    %c0_32 = arith.constant 0 : index
    %30 = vector.load %arg5[%c1_30, %c0_31, %c0_32] : memref<2x26x52xf32, #tpu.memory_space<vmem>>, vector<1x26x52xf32>
    %31 = vector.shape_cast %30 : vector<1x26x52xf32> to vector<26x52xf32>
    %cst_33 = arith.constant dense<0.000000e+00> : vector<26x208xf32>
    %32 = tpu.matmul %31, %26, %cst_33 {dimension_numbers = #tpu.dot_dimension_numbers<[1], [0], [0], [1], [0, 0, 1, 1], [], []>} : vector<26x52xf32>, vector<52x208xf32>, vector<26x208xf32> -> vector<26x208xf32>
    %33 = arith.maximumf %29, %32 : vector<26x208xf32>
    %c0_34 = arith.constant 0 : index
    %c0_35 = arith.constant 0 : index
    %c0_36 = arith.constant 0 : index
    %34 = vector.load %arg6[%c0_34, %c0_35, %c0_36] : memref<2x208x104xf32, #tpu.memory_space<vmem>>, vector<1x208x104xf32>
    %35 = vector.shape_cast %34 : vector<1x208x104xf32> to vector<208x104xf32>
    %cst_37 = arith.constant dense<0.000000e+00> : vector<26x104xf32>
    %36 = tpu.matmul %33, %35, %cst_37 {dimension_numbers = #tpu.dot_dimension_numbers<[1], [0], [0], [1], [0, 0, 1, 1], [], []>} : vector<26x208xf32>, vector<208x104xf32>, vector<26x104xf32> -> vector<26x104xf32>
    %c1_38 = arith.constant 1 : index
    %c0_39 = arith.constant 0 : index
    %c0_40 = arith.constant 0 : index
    %37 = vector.load %arg6[%c1_38, %c0_39, %c0_40] : memref<2x208x104xf32, #tpu.memory_space<vmem>>, vector<1x208x104xf32>
    %38 = vector.shape_cast %37 : vector<1x208x104xf32> to vector<208x104xf32>
    %cst_41 = arith.constant dense<0.000000e+00> : vector<26x104xf32>
    %39 = tpu.matmul %33, %38, %cst_41 {dimension_numbers = #tpu.dot_dimension_numbers<[1], [0], [0], [1], [0, 0, 1, 1], [], []>} : vector<26x208xf32>, vector<208x104xf32>, vector<26x104xf32> -> vector<26x104xf32>
    %40 = arith.maximumf %36, %39 : vector<26x104xf32>
    %c0_42 = arith.constant 0 : index
    %c0_43 = arith.constant 0 : index
    %41 = vector.load %arg7[%c0_42, %c0_43] : memref<104x130xf32, #tpu.memory_space<vmem>>, vector<104x130xf32>
    %cst_44 = arith.constant dense<0.000000e+00> : vector<26x130xf32>
    %42 = tpu.matmul %40, %41, %cst_44 {dimension_numbers = #tpu.dot_dimension_numbers<[1], [0], [0], [1], [0, 0, 1, 1], [], []>} : vector<26x104xf32>, vector<104x130xf32>, vector<26x130xf32> -> vector<26x130xf32>
    %c0_45 = arith.constant 0 : index
    %c0_46 = arith.constant 0 : index
    %43 = vector.load %arg9[%c0_45, %c0_46] : memref<2x26xf32, #tpu.memory_space<vmem>>, vector<2x26xf32>
    %c0_47 = arith.constant 0 : index
    %c0_48 = arith.constant 0 : index
    %44 = vector.load %arg8[%c0_47, %c0_48] : memref<26x130xf32, #tpu.memory_space<vmem>>, vector<26x130xf32>
    %45 = arith.mulf %42, %44 : vector<26x130xf32>
    %cst_49 = arith.constant dense<0.000000e+00> : vector<2x130xf32>
    %46 = tpu.matmul %43, %45, %cst_49 {dimension_numbers = #tpu.dot_dimension_numbers<[1], [0], [0], [1], [0, 0, 1, 1], [], []>} : vector<2x26xf32>, vector<26x130xf32>, vector<2x130xf32> -> vector<2x130xf32>
    %c0_50 = arith.constant 0 : index
    %c0_51 = arith.constant 0 : index
    %47 = vector.load %arg10[%c0_50, %c0_51] : memref<130x10xf32, #tpu.memory_space<vmem>>, vector<130x10xf32>
    %cst_52 = arith.constant dense<0.000000e+00> : vector<2x10xf32>
    %48 = tpu.matmul %46, %47, %cst_52 {dimension_numbers = #tpu.dot_dimension_numbers<[1], [0], [0], [1], [0, 0, 1, 1], [], []>} : vector<2x130xf32>, vector<130x10xf32>, vector<2x10xf32> -> vector<2x10xf32>
    %c0_53 = arith.constant 0 : index
    %c0_54 = arith.constant 0 : index
    %49 = vector.load %arg11[%c0_53, %c0_54] : memref<1x10xf32, #tpu.memory_space<vmem>>, vector<1x10xf32>
    %50 = vector.broadcast %49 : vector<1x10xf32> to vector<2x10xf32>
    %51 = arith.addf %48, %50 : vector<2x10xf32>
    %cst_55 = arith.constant 0.000000e+00 : f32
    %52 = vector.broadcast %cst_55 : f32 to vector<2x10xf32>
    %53 = arith.maximumf %51, %52 : vector<2x10xf32>
    %cst_56 = arith.constant dense<0xFF800000> : vector<2xf32>
    %54 = vector.multi_reduction <maximumf>, %53, %cst_56 [1] : vector<2x10xf32> to vector<2xf32>
    %55 = vector.shape_cast %54 : vector<2xf32> to vector<2x1xf32>
    %56 = vector.broadcast %55 : vector<2x1xf32> to vector<2x10xf32>
    %57 = arith.subf %53, %56 : vector<2x10xf32>
    %58 = math.exp %57 : vector<2x10xf32>
    %cst_57 = arith.constant dense<0.000000e+00> : vector<2xf32>
    %59 = vector.multi_reduction <add>, %58, %cst_57 [1] : vector<2x10xf32> to vector<2xf32>
    %60 = vector.shape_cast %59 : vector<2xf32> to vector<2x1xf32>
    %61 = math.log %60 : vector<2x1xf32>
    %62 = arith.addf %61, %55 : vector<2x1xf32>
    %63 = vector.broadcast %62 : vector<2x1xf32> to vector<2x10xf32>
    %64 = arith.subf %53, %63 : vector<2x10xf32>
    %c0_58 = arith.constant 0 : index
    %c0_59 = arith.constant 0 : index
    %c0_60 = arith.constant 0 : index
    %65 = vector.load %arg12[%c0_58, %c0_59, %c0_60] : memref<1x2x10xf32, #tpu.memory_space<vmem>>, vector<1x2x10xf32>
    %66 = vector.shape_cast %65 : vector<1x2x10xf32> to vector<2x10xf32>
    %67 = vector.shape_cast %64 : vector<2x10xf32> to vector<1x2x10xf32>
    tpu.vector_store %arg12[%c0_58, %c0_59, %c0_60], %67 {strides = array<i32>} : memref<1x2x10xf32, #tpu.memory_space<vmem>>, vector<1x2x10xf32>,
    return
  }
  func.func @transform_0(%arg0: i32) -> (i32, i32, i32) {
    %c0_i32 = arith.constant 0 : i32
    %c0_i32_0 = arith.constant 0 : i32
    %c0_i32_1 = arith.constant 0 : i32
    return %arg0, %c0_i32, %c0_i32_0 : i32, i32, i32
  }
  func.func @transform_1(%arg0: i32) -> (i32, i32, i32) {
    %c0_i32 = arith.constant 0 : i32
    %c0_i32_0 = arith.constant 0 : i32
    %c0_i32_1 = arith.constant 0 : i32
    %c0_i32_2 = arith.constant 0 : i32
    return %c0_i32, %c0_i32_0, %c0_i32_1 : i32, i32, i32
  }
  func.func @transform_2(%arg0: i32) -> (i32, i32, i32) {
    %c0_i32 = arith.constant 0 : i32
    %c0_i32_0 = arith.constant 0 : i32
    %c0_i32_1 = arith.constant 0 : i32
    %c0_i32_2 = arith.constant 0 : i32
    return %c0_i32, %c0_i32_0, %c0_i32_1 : i32, i32, i32
  }
  func.func @transform_3(%arg0: i32) -> (i32, i32) {
    %c0_i32 = arith.constant 0 : i32
    %c0_i32_0 = arith.constant 0 : i32
    %c0_i32_1 = arith.constant 0 : i32
    return %c0_i32, %c0_i32_0 : i32, i32
  }
  func.func @transform_4(%arg0: i32) -> (i32, i32, i32) {
    %c0_i32 = arith.constant 0 : i32
    %c0_i32_0 = arith.constant 0 : i32
    %c0_i32_1 = arith.constant 0 : i32
    %c0_i32_2 = arith.constant 0 : i32
    return %c0_i32, %c0_i32_0, %c0_i32_1 : i32, i32, i32
  }
  func.func @transform_5(%arg0: i32) -> (i32, i32, i32) {
    %c0_i32 = arith.constant 0 : i32
    %c0_i32_0 = arith.constant 0 : i32
    %c0_i32_1 = arith.constant 0 : i32
    %c0_i32_2 = arith.constant 0 : i32
    return %c0_i32, %c0_i32_0, %c0_i32_1 : i32, i32, i32
  }
  func.func @transform_6(%arg0: i32) -> (i32, i32) {
    %c0_i32 = arith.constant 0 : i32
    %c0_i32_0 = arith.constant 0 : i32
    %c0_i32_1 = arith.constant 0 : i32
    return %c0_i32, %c0_i32_0 : i32, i32
  }
  func.func @transform_7(%arg0: i32) -> (i32, i32) {
    %c0_i32 = arith.constant 0 : i32
    %c0_i32_0 = arith.constant 0 : i32
    %c0_i32_1 = arith.constant 0 : i32
    return %c0_i32, %c0_i32_0 : i32, i32
  }
  func.func @transform_8(%arg0: i32) -> (i32, i32) {
    %c0_i32 = arith.constant 0 : i32
    %c0_i32_0 = arith.constant 0 : i32
    %c0_i32_1 = arith.constant 0 : i32
    return %c0_i32, %c0_i32_0 : i32, i32
  }
  func.func @transform_9(%arg0: i32) -> (i32, i32) {
    %c0_i32 = arith.constant 0 : i32
    %c0_i32_0 = arith.constant 0 : i32
    %c0_i32_1 = arith.constant 0 : i32
    return %c0_i32, %c0_i32_0 : i32, i32
  }
  func.func @transform_10(%arg0: i32) -> (i32, i32) {
    %c0_i32 = arith.constant 0 : i32
    %c0_i32_0 = arith.constant 0 : i32
    %c0_i32_1 = arith.constant 0 : i32
    return %c0_i32, %c0_i32_0 : i32, i32
  }
  func.func @transform_11(%arg0: i32) -> (i32, i32, i32) {
    %c0_i32 = arith.constant 0 : i32
    %c0_i32_0 = arith.constant 0 : i32
    %c0_i32_1 = arith.constant 0 : i32
    return %arg0, %c0_i32, %c0_i32_0 : i32, i32, i32
  }
}

</mosaic_0001>

<bundles_post_ra>
// kernel: net_forward.1
= control target key start
LH: loop header
LB: loop body
LE: loop exit
PB: predicated region body
PF: predicated region fallthrough
CT: control target
= control target key end

     0   :  { %16 = vsyncpa [#allocation3], 0  ;;  %s2985_s0 = inlined_call_operand.hbm [shape: f32[1,56,28], index: 0, kind: input, shape index: {}]   ;;  %s2986_s1 = inlined_call_operand.hbm [shape: f32[3,52,56], index: 1, kind: input, shape index: {}]   ;;  %s2987_s2 = inlined_call_operand.vmem [shape: f32[3,28,208], index: 2, kind: input, shape index: {}]   ;;  %s2988_s3 = inlined_call_operand.vmem [shape: f32[1,208], index: 3, kind: input, shape index: {}]   ;;  %s2989_s4 = inlined_call_operand.vmem [shape: f32[2,26,52], index: 4, kind: input, shape index: {}]   ;;  %s2990_s5 = inlined_call_operand.vmem [shape: f32[2,208,104], index: 5, kind: input, shape index: {}]   ;;  %s2991_s6 = inlined_call_operand.vmem [shape: f32[104,130], index: 6, kind: input, shape index: {}]   ;;  %s2992_s7 = inlined_call_operand.hbm [shape: f32[26,130], index: 7, kind: input, shape index: {}]   ;;  %s2993_s8 = inlined_call_operand.vmem [shape: f32[2,26], index: 8, kind: input, shape index: {}]   ;;  %s2994_s9 = inlined_call_operand.vmem [shape: f32[130,10], index: 9, kind: input, shape index: {}]   ;;  %s2995_s10 = inlined_call_operand.hbm [shape: f32[1,10], index: 10, kind: input, shape index: {}]   ;;  %s2996_s11 = inlined_call_operand.hbm [shape: f32[1,2,10], index: 11, kind: output, shape index: {}]  }
   0x1   :  { %17 = vsyncpa [#allocation6], 0 }
   0x2   :  { %18 = vsyncpa [#allocation9], 0 }
   0x3   :  { %19 = vsyncpa [#allocation4], 0  ;;  %s2191_s17 = smov [#allocation5]   ;;  %s2192_s19 = smov [#allocation2]  }
   0x4   :  { %s37_s18 = sshll.u32 %s2191_s17, 4  ;;  %s25_s20 = sshll.u32 %s2192_s19, 4  ;;  %s38_s18 = int_to_ptr.vmem [resolvable:$true] %s37_s18  ;;  %s26_s20 = int_to_ptr.vmem [resolvable:$true] %s25_s20 }
   0x5   :  { %s2091_s21 = scalar_lea.vmem %s38_s18, 2688  ;;  %p2096_p1 = scmp.lt.s32.totalorder %s38_s18, %s38_s18 }
   0x6   :  { %p2092_p0 = scmp.ne.s32.totalorder %s38_s18, %s2091_s21  ;;  %p2097_p2 = scmp.lt.s32.totalorder %s2091_s21, %s2091_s21 }
   0x8   :  { %p2098_p3 = por %p2097_p2, %p2096_p1 }
   0xa   :  { %p2099_p4 = pnand %p2098_p3, %p2092_p0 }
   0xc   :  { %2102 = shalt.err (!%p2099_p4)
}
   0xd   :  { %s2193_s22 = smov 128   ;;  %s2194_s23 = smov 8  }
   0xe   :  { %43 = dma.hbm_to_vmem [thread:$0]  %s2986_s1, 2688, %s38_s18, [#allocation6], %s2193_s22, %s2193_s22, %s2194_s23  }
   0xf   :  { %s2111_s26 = scalar_lea.vmem %s26_s20, 896  ;;  %p2116_p6 = scmp.lt.s32.totalorder %s26_s20, %s26_s20 }
  0x10   :  { %p2112_p5 = scmp.ne.s32.totalorder %s26_s20, %s2111_s26  ;;  %p2117_p7 = scmp.lt.s32.totalorder %s2111_s26, %s2111_s26 }
  0x12   :  { %p2118_p8 = por %p2117_p7, %p2116_p6 }
  0x14   :  { %p2119_p9 = pnand %p2118_p8, %p2112_p5 }
  0x16   :  { %2122 = shalt.err (!%p2119_p9)
}
  0x17   :  { %31 = dma.hbm_to_vmem [thread:$0]  %s2985_s0, 896, %s26_s20, [#allocation3], %s2193_s22, %s2193_s22, %s2194_s23  }
  0x18   :  { %s2195_s29 = smov [#allocation7]  }
  0x19   :  { %s59_s30 = sshll.u32 %s2195_s29, 4  ;;  %s60_s30 = int_to_ptr.vmem [resolvable:$true] %s59_s30 }
  0x1a   :  { %s2131_s12 = scalar_lea.vmem %s60_s30, 1024  ;;  %p2136_p11 = scmp.lt.s32.totalorder %s60_s30, %s60_s30 }
  0x1b   :  { %p2132_p10 = scmp.ne.s32.totalorder %s60_s30, %s2131_s12  ;;  %p2137_p12 = scmp.lt.s32.totalorder %s2131_s12, %s2131_s12 }
  0x1d   :  { %p2138_p13 = por %p2137_p12, %p2136_p11 }
  0x1f   :  { %p2139_p0 = pnand %p2138_p13, %p2132_p10 }
  0x21   :  { %2142 = shalt.err (!%p2139_p0)
}
  0x22   :  { %s2196_s1 = smov 256   ;;  %s2197_s13 = smov 16  }
  0x23   :  { %65 = dma.hbm_to_vmem [thread:$0]  %s2992_s7, 1024, %s60_s30, [#allocation6], %s2196_s1, %s2196_s1, %s2197_s13  }
  0x24   :  { %s2198_s16 = smov [#allocation8]  }
  0x25   :  { %s76_s17 = sshll.u32 %s2198_s16, 4  ;;  %s77_s17 = int_to_ptr.vmem [resolvable:$true] %s76_s17 }
  0x26   :  { %s2151_s0 = scalar_lea.vmem %s77_s17, 16  ;;  %s2155_s18 = scalar_lea.vmem %s77_s17, 32 }
  0x27   :  { %p2152_p1 = scmp.ne.s32.totalorder %s77_s17, %s2151_s0  ;;  %p2156_p2 = scmp.lt.s32.totalorder %s77_s17, %s77_s17 }
  0x28   :  { %p2157_p3 = scmp.lt.s32.totalorder %s2155_s18, %s2151_s0 }
  0x2a   :  { %p2158_p4 = por %p2157_p3, %p2156_p2 }
  0x2c   :  { %p2159_p5 = pnand %p2158_p4, %p2152_p1 }
  0x2e   :  { %2162 = shalt.err (!%p2159_p5)
}
  0x2f   :  { %79 = dma.hbm_to_vmem [thread:$0]  %s2995_s10, 16, %s77_s17, [#allocation9]  }
  0x30   :  { %2183 = dma.done.wait [#allocation3], 896  }
  0x31   :  { %2184 = vsyncadd [#allocation3], 4294966400 }
  0x32   :  { %2185 = dma.done.wait [#allocation6], 3712  }
  0x33   :  { %2186 = vsyncadd [#allocation6], 4294963584 }
  0x34   :  { %2187 = dma.done.wait [#allocation9], 16  }
  0x35   :  { %2188 = vsyncadd [#allocation9], 4294967280  ;;  %v2199_v0 = vmov 0.0   ;;  %vm2200_vm0 = vmmov 0   ;;  %v2280_v1 = vld [vmem:[#allocation2 + $0x30] sm:$0xff]  ;;  %v2282_v2 = vld [vmem:[#allocation2 + $0x28] sm:$0xff] }
  0x36   :  { %1963 = vmatprep.subr.mxu0 %v2199_v0  ;;  %1998 = vmatprep.subr.mxu1 %v2199_v0  ;;  %v2288_v3 = vld [vmem:[#allocation2 + $0x20] sm:$0xff]  ;;  %v2294_v4 = vld [vmem:[#allocation2 + $0x18] sm:$0xff]  ;;  %v2300_v5 = vld [vmem:[#allocation2 + $0x10] sm:$0xff]  ;;  %vm106_vm1 = vcmask 457728   ;;  %vm396_vm2 = vcmask 1043456   ;;  %vm374_vm3 = vcmask 228352  }
  0x37   :  { %1977 = vmatprep.mubr.msk.f32.mxu0 %vm2200_vm0, %v2199_v0  ;;  %2012 = vmatprep.mubr.msk.f32.mxu1 %vm2200_vm0, %v2199_v0  ;;  %v2306_v6 = vld [vmem:[#allocation2 + $0x8] sm:$0xff]  ;;  %v2312_v7 = vld [vmem:[#allocation2] sm:$0xff]  ;;  %v99_v8 = vld [vmem:[#allocation5] sm:$0xff]  ;;  %vm974_vm4 = vcmask 424960   ;;  %vm1222_vm5 = vcmask 654336   ;;  %vm1462_vm6 = vcmask 850944  }
  0x38   :  { %1964 = vmatpush3.msra.mxu0 %v2280_v1  ;;  %1999 = vmatpush3.msra.mxu1 %v2280_v1  ;;  %v237_v9 = vld [vmem:[#allocation5 + $0x38] sm:$0xff]  ;;  %v1818_v10 = vld [vmem:[%s2987_s2 + $0x78] sm:$0xf]  ;;  %v100_v14 = vld [vmem:[#allocation5 + $0x8] sm:$0xff]  ;;  %vm1585_vm7 = vcmask 1041408   ;;  %vm1581_vm8 = vcmask 211968  }
  0x39   :  { %1965 = vmatprep.subr.mxu0 %v2199_v0  ;;  %2000 = vmatprep.subr.mxu1 %v2199_v0  ;;  %v235_v11 = vld [vmem:[%s2987_s2 + $0x38] sm:$0xf]  ;;  %v1817_v12 = vld [vmem:[%s2987_s2 + $0x70] sm:$0xf]  ;;  %v1816_v16 = vld [vmem:[%s2987_s2 + $0x68] sm:$0xff]  ;;  %vm1687_vm9 = vcmask 15360  }
  0x3a   :  { %1966 = vmatpush3.msra.mxu0 %v2282_v2  ;;  %2001 = vmatpush3.msra.mxu1 %v2282_v2  ;;  %v234_v13 = vld [vmem:[%s2987_s2 + $0x30] sm:$0xf]  ;;  %v238_v15 = vld [vmem:[#allocation5 + $0x40] sm:$0xff]  ;;  %v233_v17 = vld [vmem:[%s2987_s2 + $0x28] sm:$0xff]  ;;  %vm1765_vm10 = vcmask 74752  }
  0x3b   :  { %1967 = vmatprep.subr.mxu0 %v2199_v0  ;;  %2002 = vmatprep.subr.mxu1 %v2199_v0  ;;  %v1815_v18 = vld [vmem:[%s2987_s2 + $0x60] sm:$0xff]  ;;  %v101_v20 = vld [vmem:[#allocation5 + $0x10] sm:$0xff]  ;;  %v1814_v22 = vld [vmem:[%s2987_s2 + $0x58] sm:$0xff] }
  0x3c   :  { %1968 = vmatpush3.msra.mxu0 %v2288_v3  ;;  %2003 = vmatpush3.msra.mxu1 %v2288_v3  ;;  %v232_v19 = vld [vmem:[%s2987_s2 + $0x20] sm:$0xff]  ;;  %v231_v23 = vld [vmem:[%s2987_s2 + $0x18] sm:$0xff]  ;;  %v1813_v24 = vld [vmem:[%s2987_s2 + $0x50] sm:$0xff] }
  0x3d   :  { %1969 = vmatprep.subr.mxu0 %v2199_v0  ;;  %2004 = vmatprep.subr.mxu1 %v2199_v0  ;;  %v239_v21 = vld [vmem:[#allocation5 + $0x48] sm:$0xff]  ;;  %v230_v25 = vld [vmem:[%s2987_s2 + $0x10] sm:$0xff]  ;;  %v240_v27 = vld [vmem:[#allocation5 + $0x50] sm:$0xff] }
  0x3e   :  { %1970 = vmatpush3.msra.mxu0 %v2294_v4  ;;  %2005 = vmatpush3.msra.mxu1 %v2294_v4  ;;  %v102_v26 = vld [vmem:[#allocation5 + $0x18] sm:$0xff]  ;;  %v1812_v28 = vld [vmem:[%s2987_s2 + $0x48] sm:$0xff]  ;;  %v103_v30 = vld [vmem:[#allocation5 + $0x20] sm:$0xff] }
  0x3f   :  { %1971 = vmatprep.subr.mxu0 %v2199_v0  ;;  %2006 = vmatprep.subr.mxu1 %v2199_v0  ;;  %v229_v29 = vld [vmem:[%s2987_s2 + $0x8] sm:$0xff]  ;;  %v241_v31 = vld [vmem:[#allocation5 + $0x58] sm:$0xff]  ;;  %v104_v32 = vld [vmem:[#allocation5 + $0x28] sm:$0xff] }
  0x40   :  { %1972 = vmatpush3.msra.mxu0 %v2300_v5  ;;  %2007 = vmatpush3.msra.mxu1 %v2300_v5  ;;  %v242_v33 = vld [vmem:[#allocation5 + $0x60] sm:$0xff]  ;;  %v105_v34 = vld [vmem:[#allocation5 + $0x30] sm:$0xf]  ;;  %v243_v35 = vld [vmem:[#allocation5 + $0x68] sm:$0xf] }
  0x41   :  { %1973 = vmatprep.subr.mxu0 %v2199_v0  ;;  %2008 = vmatprep.subr.mxu1 %v2199_v0  ;;  %v1811_v36 = vld [vmem:[%s2987_s2 + $0x40] sm:$0xff] }
  0x42   :  { %1974 = vmatpush3.msra.mxu0 %v2306_v6  ;;  %2009 = vmatpush3.msra.mxu1 %v2306_v6  ;;  %v228_v37 = vld [vmem:[%s2987_s2] sm:$0xff] }
  0x43   :  { %1975 = vmatprep.subr.mxu0 %v2199_v0  ;;  %2010 = vmatprep.subr.mxu1 %v2199_v0 }
  0x44   :  { %1976 = vmatpush3.msra.mxu0 %v2312_v7  ;;  %2011 = vmatpush3.msra.mxu1 %v2312_v7 }
  0x45   :  { %1978 = vmatmul.mubr.msk.f32.vlgmr.msra.gmra.mxu0 %vm106_vm1, %v99_v8  ;;  %2013 = vmatmul.mubr.msk.f32.vlgmr.msra.gmra.mxu1 %vm106_vm1, %v237_v9  ;;  %v650_v8 = vld [vmem:[#allocation5 + $0x98] sm:$0xff]  ;;  %v651_v9 = vld [vmem:[#allocation5 + $0xa0] sm:$0xf] }
  0x46   :  { %1980 = vmatprep.mubr.msk.f32.mxu0 %vm2200_vm0, %v2199_v0  ;;  %2015 = vmatprep.mubr.msk.f32.mxu1 %vm2200_vm0, %v2199_v0 }
  0x47   :  { %1819 = vmatprep.subr.msk.mxu0 %vm396_vm2, %v1818_v10  ;;  %1828 = vmatprep.subr.msk.mxu1 %vm396_vm2, %v235_v11  ;;  %v1851_v10 = vld [vmem:[%s2987_s2 + $0xb8] sm:$0xf]  ;;  %v1850_v11 = vld [vmem:[%s2987_s2 + $0xb0] sm:$0xf] }
  0x48   :  { %1820 = vmatpush1.msk.msra.mxu0 %vm396_vm2, %v1817_v12  ;;  %1829 = vmatpush1.msk.msra.mxu1 %vm396_vm2, %v234_v13  ;;  %v1849_v12 = vld [vmem:[%s2987_s2 + $0xa8] sm:$0xff]  ;;  %v1848_v13 = vld [vmem:[%s2987_s2 + $0xa0] sm:$0xff] }
  0x49   :  { %1981 = vmatmul.mubr.msk.f32.gmra.mxu0 %vm106_vm1, %v100_v14  ;;  %2016 = vmatmul.mubr.msk.f32.gmra.mxu1 %vm106_vm1, %v238_v15  ;;  %v1847_v14 = vld [vmem:[%s2987_s2 + $0x98] sm:$0xff]  ;;  %v1846_v15 = vld [vmem:[%s2987_s2 + $0x90] sm:$0xff] }
  0x4a   :  { %1983 = vmatprep.mubr.msk.f32.mxu0 %vm2200_vm0, %v2199_v0  ;;  %2018 = vmatprep.mubr.msk.f32.mxu1 %vm2200_vm0, %v2199_v0 }
  0x4b   :  { %429 = vmatprep.subr.mxu0 %v1816_v16  ;;  %563 = vmatprep.subr.mxu1 %v233_v17  ;;  %v1845_v16 = vld [vmem:[%s2987_s2 + $0x88] sm:$0xff]  ;;  %v1844_v17 = vld [vmem:[%s2987_s2 + $0x80] sm:$0xff] }
  0x4c   :  { %430 = vmatpush1.msra.mxu0 %v1815_v18  ;;  %564 = vmatpush1.msra.mxu1 %v232_v19 }
  0x4d   :  { %1984 = vmatmul.mubr.msk.f32.gmra.mxu0 %vm106_vm1, %v101_v20  ;;  %2019 = vmatmul.mubr.msk.f32.gmra.mxu1 %vm106_vm1, %v239_v21 }
  0x4e   :  { %1986 = vmatprep.mubr.msk.f32.mxu0 %vm2200_vm0, %v2199_v0  ;;  %2021 = vmatprep.mubr.msk.f32.mxu1 %vm2200_vm0, %v2199_v0 }
  0x4f   :  { %431 = vmatprep.subr.mxu0 %v1814_v22  ;;  %565 = vmatprep.subr.mxu1 %v231_v23 }
  0x50   :  { %432 = vmatpush1.msra.mxu0 %v1813_v24  ;;  %566 = vmatpush1.msra.mxu1 %v230_v25 }
  0x51   :  { %1987 = vmatmul.mubr.msk.f32.gmra.mxu0 %vm106_vm1, %v102_v26  ;;  %2022 = vmatmul.mubr.msk.f32.gmra.mxu1 %vm106_vm1, %v240_v27 }
  0x52   :  { %1989 = vmatprep.mubr.msk.f32.mxu0 %vm2200_vm0, %v2199_v0  ;;  %2024 = vmatprep.mubr.msk.f32.mxu1 %vm2200_vm0, %v2199_v0 }
  0x53   :  { %433 = vmatprep.subr.mxu0 %v1812_v28  ;;  %567 = vmatprep.subr.mxu1 %v229_v29 }
  0x54   :  { %434 = vmatpush1.msra.mxu0 %v1811_v36  ;;  %568 = vmatpush1.msra.mxu1 %v228_v37 }
  0x55   :  { %1990 = vmatmul.mubr.msk.f32.gmra.mxu0 %vm106_vm1, %v103_v30  ;;  %2025 = vmatmul.mubr.msk.f32.gmra.mxu1 %vm106_vm1, %v241_v31 }
  0x56   :  { %1992 = vmatprep.mubr.msk.f32.mxu0 %vm2200_vm0, %v2199_v0  ;;  %2027 = vmatprep.mubr.msk.f32.mxu1 %vm2200_vm0, %v2199_v0 }
  0x57   :  { %2033 = vmatprep.subr.mxu0 %v2199_v0  ;;  %1852 = vmatprep.subr.msk.mxu1 %vm396_vm2, %v1851_v10 }
  0x59   :  { %1993 = vmatmul.mubr.msk.f32.gmra.mxu0 %vm106_vm1, %v104_v32  ;;  %2028 = vmatmul.mubr.msk.f32.gmra.mxu1 %vm106_vm1, %v242_v33 }
  0x5a   :  { %1995 = vmatprep.mubr.msk.f32.mxu0 %vm2200_vm0, %v2199_v0  ;;  %2030 = vmatprep.mubr.msk.f32.mxu1 %vm2200_vm0, %v2199_v0 }
  0x5d   :  { %1996 = vmatmul.mubr.msk.f32.gmra.mxu0 %vm106_vm1, %v105_v34  ;;  %2031 = vmatmul.mubr.msk.f32.gmra.mxu1 %vm106_vm1, %v243_v35 }
  0x5e   :  { %467 = vmatprep.mubr.f32.mxu0 %v2199_v0  ;;  %601 = vmatprep.mubr.f32.mxu1 %v2199_v0 }
 0x105   :  { %v194_v38 = vpop.f32.mrf.mxu0  ;;  %v331_v39 = vpop.f32.mrf.mxu1 }
 0x106   :  { %1821 = vmatmul.mubr.msk.f32.vlgmr.msra.gmra.mxu0 %vm374_vm3, %v331_v39  ;;  %1830 = vmatmul.mubr.msk.f32.vlgmr.msra.gmra.mxu1 %vm374_vm3, %v194_v38 }
 0x107   :  { %v1979_v40 = vpop.f32.mrf.mxu0  ;;  %v2014_v41 = vpop.f32.mrf.mxu1  ;;  %473 = vmatprep.mubr.f32.mxu0 %v2199_v0  ;;  %607 = vmatprep.mubr.f32.mxu1 %v2199_v0 }
 0x108   :  { %2034 = vmatpush3.msra.mxu0 %v2280_v1  ;;  %1853 = vmatpush1.msk.msra.mxu1 %vm396_vm2, %v1850_v11 }
 0x109   :  { %v199_v42 = vpop.f32.mrf.mxu0  ;;  %v336_v43 = vpop.f32.mrf.mxu1  ;;  %2035 = vmatprep.subr.mxu0 %v2199_v0  ;;  %835 = vmatprep.subr.mxu1 %v1849_v12 }
 0x10a   :  { %1822 = vmatmul.mubr.msk.f32.gmra.mxu0 %vm374_vm3, %v336_v43  ;;  %1831 = vmatmul.mubr.msk.f32.gmra.mxu1 %vm374_vm3, %v199_v42 }
 0x10b   :  { %v1982_v44 = vpop.f32.mrf.mxu0  ;;  %v2017_v45 = vpop.f32.mrf.mxu1  ;;  %479 = vmatprep.mubr.f32.mxu0 %v2199_v0  ;;  %613 = vmatprep.mubr.f32.mxu1 %v2199_v0 }
 0x10c   :  { %2036 = vmatpush3.msra.mxu0 %v2282_v2  ;;  %v645_v2 = vld [vmem:[#allocation5 + $0x70] sm:$0xff]  ;;  %836 = vmatpush1.msra.mxu1 %v1848_v13 }
 0x10d   :  { %v204_v46 = vpop.f32.mrf.mxu0  ;;  %v341_v47 = vpop.f32.mrf.mxu1  ;;  %2037 = vmatprep.subr.mxu0 %v2199_v0  ;;  %837 = vmatprep.subr.mxu1 %v1847_v14 }
 0x10e   :  { %1823 = vmatmul.mubr.msk.f32.gmra.mxu0 %vm374_vm3, %v341_v47  ;;  %1832 = vmatmul.mubr.msk.f32.gmra.mxu1 %vm374_vm3, %v204_v46 }
 0x10f   :  { %v1985_v48 = vpop.f32.mrf.mxu0  ;;  %v2020_v49 = vpop.f32.mrf.mxu1  ;;  %485 = vmatprep.mubr.f32.mxu0 %v2199_v0  ;;  %619 = vmatprep.mubr.f32.mxu1 %v2199_v0 }
 0x110   :  { %2038 = vmatpush3.msra.mxu0 %v2288_v3  ;;  %838 = vmatpush1.msra.mxu1 %v1846_v15  ;;  %v930_v15 = vld [vmem:[%s2988_s3] sm:$0x3] }
 0x111   :  { %v209_v50 = vpop.f32.mrf.mxu0  ;;  %v346_v51 = vpop.f32.mrf.mxu1  ;;  %2039 = vmatprep.subr.mxu0 %v2199_v0  ;;  %839 = vmatprep.subr.mxu1 %v1845_v16 }
 0x112   :  { %1824 = vmatmul.mubr.msk.f32.gmra.mxu0 %vm374_vm3, %v346_v51  ;;  %1833 = vmatmul.mubr.msk.f32.gmra.mxu1 %vm374_vm3, %v209_v50 }
 0x113   :  { %v1988_v52 = vpop.f32.mrf.mxu0  ;;  %v2023_v53 = vpop.f32.mrf.mxu1  ;;  %491 = vmatprep.mubr.f32.mxu0 %v2199_v0  ;;  %625 = vmatprep.mubr.f32.mxu1 %v2199_v0 }
 0x114   :  { %2040 = vmatpush3.msra.mxu0 %v2294_v4  ;;  %v646_v4 = vld [vmem:[#allocation5 + $0x78] sm:$0xff]  ;;  %840 = vmatpush1.msra.mxu1 %v1844_v17 }
 0x115   :  { %v214_v54 = vpop.f32.mrf.mxu0  ;;  %v351_v55 = vpop.f32.mrf.mxu1  ;;  %2041 = vmatprep.subr.mxu0 %v2199_v0 }
 0x116   :  { %1825 = vmatmul.mubr.msk.f32.gmra.mxu0 %vm374_vm3, %v351_v55  ;;  %1834 = vmatmul.mubr.msk.f32.gmra.mxu1 %vm374_vm3, %v214_v54 }
 0x117   :  { %v1991_v56 = vpop.f32.mrf.mxu0  ;;  %v2026_v57 = vpop.f32.mrf.mxu1  ;;  %497 = vmatprep.mubr.f32.mxu0 %v2199_v0  ;;  %631 = vmatprep.mubr.f32.mxu1 %v2199_v0 }
 0x118   :  { %2042 = vmatpush3.msra.mxu0 %v2300_v5  ;;  %v647_v5 = vld [vmem:[#allocation5 + $0x80] sm:$0xff] }
 0x119   :  { %v219_v58 = vpop.f32.mrf.mxu0  ;;  %v356_v59 = vpop.f32.mrf.mxu1  ;;  %2043 = vmatprep.subr.mxu0 %v2199_v0 }
 0x11a   :  { %1826 = vmatmul.mubr.msk.f32.gmra.mxu0 %vm374_vm3, %v356_v59  ;;  %1835 = vmatmul.mubr.msk.f32.gmra.mxu1 %vm374_vm3, %v219_v58 }
 0x11b   :  { %v1994_v60 = vpop.f32.mrf.mxu0  ;;  %v2029_v61 = vpop.f32.mrf.mxu1  ;;  %503 = vmatprep.mubr.f32.mxu0 %v2199_v0  ;;  %637 = vmatprep.mubr.f32.mxu1 %v2199_v0 }
 0x11c   :  { %2044 = vmatpush3.msra.mxu0 %v2306_v6  ;;  %v648_v6 = vld [vmem:[#allocation5 + $0x88] sm:$0xff] }
 0x11d   :  { %v224_v62 = vpop.f32.mrf.mxu0  ;;  %v361_v63 = vpop.f32.mrf.mxu1  ;;  %2045 = vmatprep.subr.mxu0 %v2199_v0 }
 0x11e   :  { %1827 = vmatmul.mubr.msk.f32.gmra.mxu0 %vm374_vm3, %v361_v63  ;;  %1836 = vmatmul.mubr.msk.f32.gmra.mxu1 %vm374_vm3, %v224_v62 }
 0x11f   :  { %v2032_v1 = vpop.f32.mrf.mxu1  ;;  %2046 = vmatpush3.msra.mxu0 %v2312_v7  ;;  %2047 = vmatprep.mubr.msk.f32.mxu0 %vm2200_vm0, %v2199_v0  ;;  %v1997_v3 = vpop.f32.mrf.mxu0  ;;  %v649_v7 = vld [vmem:[#allocation5 + $0x90] sm:$0xff] }
 0x120   :  { %873 = vmatprep.mubr.f32.mxu1 %v2199_v0 }
 0x122   :  { %2048 = vmatmul.mubr.msk.f32.vlgmr.msra.gmra.mxu0 %vm106_vm1, %v645_v2 }
 0x123   :  { %2050 = vmatprep.mubr.msk.f32.mxu0 %vm2200_vm0, %v2199_v0 }
 0x126   :  { %2051 = vmatmul.mubr.msk.f32.gmra.mxu0 %vm106_vm1, %v646_v4 }
 0x127   :  { %2053 = vmatprep.mubr.msk.f32.mxu0 %vm2200_vm0, %v2199_v0 }
 0x12a   :  { %2054 = vmatmul.mubr.msk.f32.gmra.mxu0 %vm106_vm1, %v647_v5  ;;  %v932_v5 = vlaneseq }
 0x12b   :  { %2056 = vmatprep.mubr.msk.f32.mxu0 %vm2200_vm0, %v2199_v0 }
 0x12e   :  { %2057 = vmatmul.mubr.msk.f32.gmra.mxu0 %vm106_vm1, %v648_v6 }
 0x12f   :  { %2059 = vmatprep.mubr.msk.f32.mxu0 %vm2200_vm0, %v2199_v0 }
 0x132   :  { %2060 = vmatmul.mubr.msk.f32.gmra.mxu0 %vm106_vm1, %v649_v7 }
 0x133   :  { %2062 = vmatprep.mubr.msk.f32.mxu0 %vm2200_vm0, %v2199_v0 }
 0x136   :  { %2063 = vmatmul.mubr.msk.f32.gmra.mxu0 %vm106_vm1, %v650_v8  ;;  %v933_v8 = vshrl.u32 %v932_v5, 7 }
 0x137   :  { %2065 = vmatprep.mubr.msk.f32.mxu0 %vm2200_vm0, %v2199_v0 }
 0x138   :  { %v934_v11 = vsub.s32 0, %v933_v8  ;;  %v938_v16 = vsub.s32 1, %v933_v8 }
 0x13a   :  { %2066 = vmatmul.mubr.msk.f32.gmra.mxu0 %vm106_vm1, %v651_v9 }
 0x13b   :  { %1057 = vmatprep.mubr.f32.mxu0 %v2199_v0 }
 0x1c6   :  { %v469_v18 = vpop.f32.mrf.mxu0  ;;  %v603_v19 = vpop.f32.mrf.mxu1 }
 0x1c7   :  { %v2501_v20 = vadd.f32 %v603_v19, %v469_v18 }
 0x1c8   :  { %v2503_v21 = vpop.f32.mrf.mxu0  ;;  %v2539_v48 = vpop.f32.mrf.mxu1 }
 0x1ca   :  { %v2505_v22 = vpop.f32.mrf.mxu0  ;;  %v609_v49 = vpop.f32.mrf.mxu1 }
 0x1cc   :  { %v2507_v23 = vpop.f32.mrf.mxu0  ;;  %v611_v50 = vpop.f32.mrf.mxu1 }
 0x1ce   :  { %v2509_v24 = vpop.f32.mrf.mxu0  ;;  %v615_v51 = vpop.f32.mrf.mxu1 }
 0x1d0   :  { %v2511_v25 = vpop.f32.mrf.mxu0  ;;  %v617_v52 = vpop.f32.mrf.mxu1 }
 0x1d2   :  { %v2513_v26 = vpop.f32.mrf.mxu0  ;;  %v621_v53 = vpop.f32.mrf.mxu1 }
 0x1d4   :  { %v2515_v27 = vpop.f32.mrf.mxu0  ;;  %v623_v54 = vpop.f32.mrf.mxu1 }
 0x1d6   :  { %v2517_v28 = vpop.f32.mrf.mxu0  ;;  %v627_v55 = vpop.f32.mrf.mxu1 }
 0x1d8   :  { %v2519_v29 = vpop.f32.mrf.mxu0  ;;  %v629_v56 = vpop.f32.mrf.mxu1 }
 0x1d9   :  { %v630_v19 = vadd.f32 %v629_v56, %v2519_v29  ;;  %v618_v29 = vadd.f32 %v617_v52, %v2511_v25  ;;  %v612_v56 = vadd.f32 %v611_v50, %v2507_v23  ;;  %v606_v25 = vadd.f32 %v2539_v48, %v2503_v21 }
 0x1da   :  { %v2521_v30 = vpop.f32.mrf.mxu0  ;;  %v633_v57 = vpop.f32.mrf.mxu1 }
 0x1db   :  { %v634_v17 = vadd.f32 %v633_v57, %v2521_v30 }
 0x1dc   :  { %v501_v31 = vpop.f32.mrf.mxu0  ;;  %v635_v58 = vpop.f32.mrf.mxu1 }
 0x1dd   :  { %v636_v13 = vadd.f32 %v635_v58, %v501_v31  ;;  %v610_v58 = vadd.f32 %v609_v49, %v2505_v22 }
 0x1de   :  { %v505_v32 = vpop.f32.mrf.mxu0  ;;  %v639_v59 = vpop.f32.mrf.mxu1 }
 0x1df   :  { %v640_v14 = vadd.f32 %v639_v59, %v505_v32  ;;  %v624_v32 = vadd.f32 %v623_v54, %v2515_v27 }
 0x1e0   :  { %v2523_v33 = vpop.f32.mrf.mxu0  ;;  %v641_v60 = vpop.f32.mrf.mxu1 }
 0x1e2   :  { %v739_v34 = vpop.f32.mrf.mxu0 }
 0x1e3   :  { %1854 = vmatmul.mubr.msk.f32.vlgmr.msra.gmra.mxu1 %vm374_vm3, %v739_v34  ;;  %v642_v34 = vadd.f32 %v641_v60, %v2523_v33 }
 0x1e4   :  { %v2049_v35 = vpop.f32.mrf.mxu0  ;;  %879 = vmatprep.mubr.f32.mxu1 %v2199_v0 }
 0x1e6   :  { %v744_v36 = vpop.f32.mrf.mxu0 }
 0x1e7   :  { %1855 = vmatmul.mubr.msk.f32.gmra.mxu1 %vm374_vm3, %v744_v36 }
 0x1e8   :  { %v2052_v37 = vpop.f32.mrf.mxu0  ;;  %885 = vmatprep.mubr.f32.mxu1 %v2199_v0 }
 0x1e9   :  { %v628_v37 = vadd.f32 %v627_v55, %v2517_v28 }
 0x1ea   :  { %v749_v38 = vpop.f32.mrf.mxu0 }
 0x1eb   :  { %1856 = vmatmul.mubr.msk.f32.gmra.mxu1 %vm374_vm3, %v749_v38  ;;  %v935_v38 = vrot.slane %v930_v15, %v934_v11  ;;  %v970_v11 = vld [vmem:[%s2989_s4] sm:$0xff] }
 0x1ec   :  { %v2055_v39 = vpop.f32.mrf.mxu0  ;;  %891 = vmatprep.mubr.f32.mxu1 %v2199_v0 }
 0x1ee   :  { %v754_v40 = vpop.f32.mrf.mxu0 }
 0x1ef   :  { %1857 = vmatmul.mubr.msk.f32.gmra.mxu1 %vm374_vm3, %v754_v40  ;;  %v939_v40 = vrot.slane %v930_v15, %v938_v16  ;;  %v971_v15 = vld [vmem:[%s2989_s4 + $0x8] sm:$0xff] }
 0x1f0   :  { %v2058_v41 = vpop.f32.mrf.mxu0  ;;  %897 = vmatprep.mubr.f32.mxu1 %v2199_v0  ;;  %v1868_v16 = vld [vmem:[%s2989_s4 + $0x28] sm:$0xff] }
 0x1f2   :  { %v759_v42 = vpop.f32.mrf.mxu0 }
 0x1f3   :  { %1858 = vmatmul.mubr.msk.f32.gmra.mxu1 %vm374_vm3, %v759_v42 }
 0x1f4   :  { %v2061_v43 = vpop.f32.mrf.mxu0  ;;  %903 = vmatprep.mubr.f32.mxu1 %v2199_v0 }
 0x1f5   :  { %v622_v43 = vadd.f32 %v621_v53, %v2513_v26 }
 0x1f6   :  { %v764_v44 = vpop.f32.mrf.mxu0 }
 0x1f7   :  { %1859 = vmatmul.mubr.msk.f32.gmra.mxu1 %vm374_vm3, %v764_v44 }
 0x1f8   :  { %v2064_v45 = vpop.f32.mrf.mxu0  ;;  %909 = vmatprep.mubr.f32.mxu1 %v2199_v0 }
 0x1fa   :  { %v769_v46 = vpop.f32.mrf.mxu0 }
 0x1fb   :  { %1860 = vmatmul.mubr.msk.f32.gmra.mxu1 %vm374_vm3, %v769_v46 }
 0x1fc   :  { %v2067_v47 = vpop.f32.mrf.mxu0  ;;  %1163 = vmatprep.mubr.f32.mxu1 %v2199_v0 }
 0x1fd   :  { %v616_v47 = vadd.f32 %v615_v51, %v2509_v24 }
 0x2a3   :  { %v2541_v61 = vpop.f32.mrf.mxu1 }
 0x2a4   :  { %v916_v21 = vadd.f32 %v2541_v61, %v2501_v20 }
 0x2a5   :  { %v877_v62 = vpop.f32.mrf.mxu1 }
 0x2a6   :  { %v917_v22 = vadd.f32 %v877_v62, %v606_v25  ;;  %v1196_v25 = vld [vmem:[%s2990_s5] sm:$0xff] }
 0x2a7   :  { %v881_v63 = vpop.f32.mrf.mxu1 }
 0x2a8   :  { %v918_v24 = vadd.f32 %v881_v63, %v610_v58  ;;  %v943_v62 = vadd.f32 %v939_v40, %v917_v22  ;;  %v1198_v58 = vld [vmem:[%s2990_s5 + $0x10] sm:$0xff]  ;;  %v1904_v22 = vld [vmem:[%s2990_s5 + $0x188] sm:$0xff] }
 0x2a9   :  { %v883_v1 = vpop.f32.mrf.mxu1 }
 0x2aa   :  { %v919_v52 = vadd.f32 %v883_v1, %v612_v56  ;;  %v1200_v56 = vld [vmem:[%s2990_s5 + $0x20] sm:$0xff] }
 0x2ab   :  { %v887_v2 = vpop.f32.mrf.mxu1 }
 0x2ac   :  { %v920_v59 = vadd.f32 %v887_v2, %v616_v47  ;;  %v945_v2 = vadd.f32 %v939_v40, %v919_v52  ;;  %v1887_v47 = vld [vmem:[%s2990_s5 + $0x100] sm:$0xff]  ;;  %v1881_v52 = vld [vmem:[%s2990_s5 + $0xd0] sm:$0xff] }
 0x2ad   :  { %v889_v3 = vpop.f32.mrf.mxu1 }
 0x2ae   :  { %v921_v57 = vadd.f32 %v889_v3, %v618_v29  ;;  %v946_v48 = vadd.f32 %v935_v38, %v920_v59  ;;  %v944_v3 = vadd.f32 %v935_v38, %v918_v24  ;;  %v959_v20 = vmax.f32 %v945_v2, 0.0  ;;  %v1889_v29 = vld [vmem:[%s2990_s5 + $0x110] sm:$0xff]  ;;  %v1883_v59 = vld [vmem:[%s2990_s5 + $0xe0] sm:$0xff] }
 0x2af   :  { %v893_v4 = vpop.f32.mrf.mxu1  ;;  %v1220_v24 = vld [vmem:[%s2990_s5 + $0xc0] sm:$0xff]  ;;  %v1901_v2 = vld [vmem:[%s2990_s5 + $0x170] sm:$0xff] }
 0x2b0   :  { %v922_v28 = vadd.f32 %v893_v4, %v622_v43  ;;  %v947_v49 = vadd.f32 %v939_v40, %v921_v57  ;;  %v960_v8 = vmax.f32 %v946_v48, 0.0  ;;  %v958_v61 = vmax.f32 %v944_v3, 0.0  ;;  %v1205_v43 = vld [vmem:[%s2990_s5 + $0x48] sm:$0xff]  ;;  %v1885_v57 = vld [vmem:[%s2990_s5 + $0xf0] sm:$0xff]  ;;  %v1902_v48 = vld [vmem:[%s2990_s5 + $0x178] sm:$0xff] }
 0x2b1   :  { %v895_v6 = vpop.f32.mrf.mxu1  ;;  %v1900_v3 = vld [vmem:[%s2990_s5 + $0x168] sm:$0xff] }
 0x2b2   :  { %v923_v45 = vadd.f32 %v895_v6, %v624_v32  ;;  %v948_v23 = vadd.f32 %v935_v38, %v922_v28  ;;  %v961_v6 = vmax.f32 %v947_v49, 0.0  ;;  %v1207_v32 = vld [vmem:[%s2990_s5 + $0x58] sm:$0xff]  ;;  %v1201_v28 = vld [vmem:[%s2990_s5 + $0x28] sm:$0xff]  ;;  %v1218_v49 = vld [vmem:[%s2990_s5 + $0xb0] sm:$0xff] }
 0x2b3   :  { %v899_v7 = vpop.f32.mrf.mxu1 }
 0x2b4   :  { %v924_v30 = vadd.f32 %v899_v7, %v628_v37  ;;  %v949_v60 = vadd.f32 %v939_v40, %v923_v45  ;;  %v962_v4 = vmax.f32 %v948_v23, 0.0  ;;  %v942_v7 = vadd.f32 %v935_v38, %v916_v21  ;;  %v973_v37 = vld [vmem:[%s2989_s4 + $0x18] sm:$0x3]  ;;  %v1905_v23 = vld [vmem:[%s2990_s5 + $0x190] sm:$0xff]  ;;  %v1217_v21 = vld [vmem:[%s2990_s5 + $0xa8] sm:$0xff] }
 0x2b5   :  { %v901_v9 = vpop.f32.mrf.mxu1  ;;  %v1203_v45 = vld [vmem:[%s2990_s5 + $0x38] sm:$0xff] }
 0x2b6   :  { %v925_v41 = vadd.f32 %v901_v9, %v630_v19  ;;  %v950_v26 = vadd.f32 %v935_v38, %v924_v30  ;;  %v963_v63 = vmax.f32 %v949_v60, 0.0  ;;  %v957_v9 = vmax.f32 %v943_v62, 0.0  ;;  %v972_v19 = vld [vmem:[%s2989_s4 + $0x10] sm:$0xff]  ;;  %v1890_v30 = vld [vmem:[%s2990_s5 + $0x118] sm:$0xff]  ;;  %v1221_v60 = vld [vmem:[%s2990_s5 + $0xc8] sm:$0xff] }
 0x2b7   :  { %v905_v10 = vpop.f32.mrf.mxu1  ;;  %v1899_v62 = vld [vmem:[%s2990_s5 + $0x160] sm:$0xff] }
 0x2b8   :  { %v926_v39 = vadd.f32 %v905_v10, %v634_v17  ;;  %v951_v27 = vadd.f32 %v939_v40, %v925_v41  ;;  %v964_v1 = vmax.f32 %v950_v26, 0.0  ;;  %v956_v10 = vmax.f32 %v942_v7, 0.0  ;;  %v1210_v17 = vld [vmem:[%s2990_s5 + $0x70] sm:$0xff]  ;;  %v1197_v26 = vld [vmem:[%s2990_s5 + $0x8] sm:$0xff]  ;;  %v1898_v7 = vld [vmem:[%s2990_s5 + $0x158] sm:$0xff] }
 0x2b9   :  { %v907_v12 = vpop.f32.mrf.mxu1  ;;  %v1206_v41 = vld [vmem:[%s2990_s5 + $0x50] sm:$0xff] }
 0x2ba   :  { %v927_v35 = vadd.f32 %v907_v12, %v636_v13  ;;  %v952_v55 = vadd.f32 %v935_v38, %v926_v39  ;;  %v965_v51 = vmax.f32 %v951_v27, 0.0  ;;  %v1867_v12 = vld [vmem:[%s2989_s4 + $0x20] sm:$0xff]  ;;  %v1211_v13 = vld [vmem:[%s2990_s5 + $0x78] sm:$0xff] }
 0x2bb   :  { %v911_v18 = vpop.f32.mrf.mxu1  ;;  %v1208_v39 = vld [vmem:[%s2990_s5 + $0x60] sm:$0xff]  ;;  %v1199_v27 = vld [vmem:[%s2990_s5 + $0x18] sm:$0xff] }
 0x2bc   :  { %v928_v36 = vadd.f32 %v911_v18, %v640_v14  ;;  %v953_v33 = vadd.f32 %v939_v40, %v927_v35  ;;  %v966_v50 = vmax.f32 %v952_v55, 0.0  ;;  %v1896_v14 = vld [vmem:[%s2990_s5 + $0x148] sm:$0xff]  ;;  %v1895_v18 = vld [vmem:[%s2990_s5 + $0x140] sm:$0xff]  ;;  %v1886_v55 = vld [vmem:[%s2990_s5 + $0xf8] sm:$0xff] }
 0x2bd   :  { %v913_v31 = vpop.f32.mrf.mxu1  ;;  %v1209_v35 = vld [vmem:[%s2990_s5 + $0x68] sm:$0xff] }
 0x2be   :  { %v929_v42 = vadd.f32 %v913_v31, %v642_v34  ;;  %v954_v44 = vadd.f32 %v935_v38, %v928_v36  ;;  %v967_v5 = vmax.f32 %v953_v33, 0.0  ;;  %v1869_v34 = vld [vmem:[%s2989_s4 + $0x30] sm:$0xff]  ;;  %v1894_v36 = vld [vmem:[%s2990_s5 + $0x138] sm:$0xff]  ;;  %v1888_v33 = vld [vmem:[%s2990_s5 + $0x108] sm:$0xff] }
 0x2bf   :  { %v1870_v38 = vld [vmem:[%s2989_s4 + $0x38] sm:$0x3]  ;;  %v1893_v31 = vld [vmem:[%s2990_s5 + $0x130] sm:$0xff] }
 0x2c0   :  { %v955_v46 = vadd.f32 %v939_v40, %v929_v42  ;;  %v968_v53 = vmax.f32 %v954_v44, 0.0  ;;  %v1892_v40 = vld [vmem:[%s2990_s5 + $0x128] sm:$0xff]  ;;  %v1891_v42 = vld [vmem:[%s2990_s5 + $0x120] sm:$0xff] }
 0x2c1   :  { %v1204_v44 = vld [vmem:[%s2990_s5 + $0x40] sm:$0xff] }
 0x2c2   :  { %v969_v54 = vmax.f32 %v955_v46, 0.0  ;;  %v1202_v46 = vld [vmem:[%s2990_s5 + $0x30] sm:$0xff] }
 0x2c4   :  { %1861 = vmatprep.subr.msk.mxu0 %vm396_vm2, %v969_v54  ;;  %1871 = vmatprep.subr.msk.mxu1 %vm396_vm2, %v969_v54  ;;  %v1884_v54 = vld [vmem:[%s2990_s5 + $0xe8] sm:$0xff] }
 0x2c5   :  { %1862 = vmatpush1.msk.msra.mxu0 %vm396_vm2, %v968_v53  ;;  %1872 = vmatpush1.msk.msra.mxu1 %vm396_vm2, %v968_v53  ;;  %v1882_v53 = vld [vmem:[%s2990_s5 + $0xd8] sm:$0xff] }
 0x2c6   :  { %1013 = vmatprep.subr.mxu0 %v967_v5  ;;  %1119 = vmatprep.subr.mxu1 %v967_v5  ;;  %v1906_v5 = vld [vmem:[%s2990_s5 + $0x198] sm:$0xff] }
 0x2c7   :  { %1014 = vmatpush1.msra.mxu0 %v966_v50  ;;  %1120 = vmatpush1.msra.mxu1 %v966_v50  ;;  %v1219_v50 = vld [vmem:[%s2990_s5 + $0xb8] sm:$0xff] }
 0x2c8   :  { %1015 = vmatprep.subr.mxu0 %v965_v51  ;;  %1121 = vmatprep.subr.mxu1 %v965_v51  ;;  %v1903_v51 = vld [vmem:[%s2990_s5 + $0x180] sm:$0xff] }
 0x2c9   :  { %1016 = vmatpush1.msra.mxu0 %v964_v1  ;;  %1122 = vmatpush1.msra.mxu1 %v964_v1  ;;  %v1216_v1 = vld [vmem:[%s2990_s5 + $0xa0] sm:$0xff] }
 0x2ca   :  { %1017 = vmatprep.subr.mxu0 %v963_v63  ;;  %1123 = vmatprep.subr.mxu1 %v963_v63  ;;  %v1215_v63 = vld [vmem:[%s2990_s5 + $0x98] sm:$0xff] }
 0x2cb   :  { %1018 = vmatpush1.msra.mxu0 %v962_v4  ;;  %1124 = vmatpush1.msra.mxu1 %v962_v4  ;;  %v1214_v4 = vld [vmem:[%s2990_s5 + $0x90] sm:$0xff] }
 0x2cc   :  { %1019 = vmatprep.subr.mxu0 %v961_v6  ;;  %1125 = vmatprep.subr.mxu1 %v961_v6  ;;  %v1213_v6 = vld [vmem:[%s2990_s5 + $0x88] sm:$0xff] }
 0x2cd   :  { %1020 = vmatpush1.msra.mxu0 %v960_v8  ;;  %1126 = vmatpush1.msra.mxu1 %v960_v8  ;;  %v1212_v8 = vld [vmem:[%s2990_s5 + $0x80] sm:$0xff] }
 0x2ce   :  { %1021 = vmatprep.subr.mxu0 %v959_v20  ;;  %1127 = vmatprep.subr.mxu1 %v959_v20  ;;  %v1897_v20 = vld [vmem:[%s2990_s5 + $0x150] sm:$0xff] }
 0x2cf   :  { %1022 = vmatpush1.msra.mxu0 %v958_v61  ;;  %1128 = vmatpush1.msra.mxu1 %v958_v61  ;;  %v1461_v61 = vld [vmem:[%s2991_s6 + $0xc8] sm:$0xff] }
 0x2d0   :  { %1023 = vmatprep.subr.mxu0 %v957_v9  ;;  %1129 = vmatprep.subr.mxu1 %v957_v9 }
 0x2d1   :  { %1024 = vmatpush1.msra.mxu0 %v956_v10  ;;  %1130 = vmatpush1.msra.mxu1 %v956_v10 }
 0x2d2   :  { %1863 = vmatmul.mubr.msk.f32.vlgmr.msra.gmra.mxu0 %vm974_vm4, %v970_v11  ;;  %1873 = vmatmul.mubr.msk.f32.vlgmr.msra.gmra.mxu1 %vm974_vm4, %v1867_v12 }
 0x2d3   :  { %1063 = vmatprep.mubr.f32.mxu0 %v2199_v0  ;;  %1169 = vmatprep.mubr.f32.mxu1 %v2199_v0 }
 0x2d4   :  { %1235 = vmatprep.subr.mxu0 %v2199_v0  ;;  %1347 = vmatprep.subr.mxu1 %v2199_v0 }
 0x2d5   :  { %1236 = vmatpush1.msra.mxu0 %v1211_v13  ;;  %1348 = vmatpush1.msra.mxu1 %v1896_v14 }
 0x2d6   :  { %1864 = vmatmul.mubr.msk.f32.gmra.mxu0 %vm974_vm4, %v971_v15  ;;  %1874 = vmatmul.mubr.msk.f32.gmra.mxu1 %vm974_vm4, %v1868_v16 }
 0x2d7   :  { %1069 = vmatprep.mubr.f32.mxu0 %v2199_v0  ;;  %1175 = vmatprep.mubr.f32.mxu1 %v2199_v0 }
 0x2d8   :  { %1237 = vmatprep.subr.mxu0 %v2199_v0  ;;  %1349 = vmatprep.subr.mxu1 %v2199_v0 }
 0x2d9   :  { %1238 = vmatpush1.msra.mxu0 %v1210_v17  ;;  %1350 = vmatpush1.msra.mxu1 %v1895_v18  ;;  %v1460_v17 = vld [vmem:[%s2991_s6 + $0xc0] sm:$0xff]  ;;  %v1459_v18 = vld [vmem:[%s2991_s6 + $0xb8] sm:$0xff] }
 0x2da   :  { %1865 = vmatmul.mubr.msk.f32.gmra.mxu0 %vm974_vm4, %v972_v19  ;;  %1875 = vmatmul.mubr.msk.f32.gmra.mxu1 %vm974_vm4, %v1869_v34 }
 0x2db   :  { %1075 = vmatprep.mubr.f32.mxu0 %v2199_v0  ;;  %1181 = vmatprep.mubr.f32.mxu1 %v2199_v0 }
 0x2dc   :  { %1239 = vmatprep.subr.mxu0 %v2199_v0  ;;  %1351 = vmatprep.subr.mxu1 %v2199_v0 }
 0x2dd   :  { %1240 = vmatpush1.msra.mxu0 %v1209_v35  ;;  %1352 = vmatpush1.msra.mxu1 %v1894_v36 }
 0x2de   :  { %1866 = vmatmul.mubr.msk.f32.gmra.mxu0 %vm974_vm4, %v973_v37  ;;  %1876 = vmatmul.mubr.msk.f32.gmra.mxu1 %vm974_vm4, %v1870_v38 }
 0x2df   :  { %1241 = vmatprep.subr.mxu0 %v2199_v0  ;;  %1353 = vmatprep.subr.mxu1 %v2199_v0 }
 0x2e0   :  { %1242 = vmatpush1.msra.mxu0 %v1208_v39  ;;  %1354 = vmatpush1.msra.mxu1 %v1893_v31  ;;  %v1458_v39 = vld [vmem:[%s2991_s6 + $0xb0] sm:$0xff]  ;;  %v1457_v31 = vld [vmem:[%s2991_s6 + $0xa8] sm:$0xff] }
 0x2e1   :  { %1243 = vmatprep.subr.mxu0 %v2199_v0  ;;  %1355 = vmatprep.subr.mxu1 %v2199_v0 }
 0x2e2   :  { %1244 = vmatpush1.msra.mxu0 %v1207_v32  ;;  %1356 = vmatpush1.msra.mxu1 %v1892_v40 }
 0x2e3   :  { %1245 = vmatprep.subr.mxu0 %v2199_v0  ;;  %1357 = vmatprep.subr.mxu1 %v2199_v0 }
 0x2e4   :  { %1246 = vmatpush1.msra.mxu0 %v1206_v41  ;;  %1358 = vmatpush1.msra.mxu1 %v1891_v42 }
 0x2e5   :  { %1247 = vmatprep.subr.mxu0 %v2199_v0  ;;  %1359 = vmatprep.subr.mxu1 %v2199_v0 }
 0x2e6   :  { %1248 = vmatpush1.msra.mxu0 %v1205_v43  ;;  %1360 = vmatpush1.msra.mxu1 %v1890_v30 }
 0x2e7   :  { %1249 = vmatprep.subr.mxu0 %v2199_v0  ;;  %1361 = vmatprep.subr.mxu1 %v2199_v0 }
 0x2e8   :  { %1250 = vmatpush1.msra.mxu0 %v1204_v44  ;;  %1362 = vmatpush1.msra.mxu1 %v1889_v29  ;;  %v1456_v44 = vld [vmem:[%s2991_s6 + $0xa0] sm:$0xff]  ;;  %v1455_v29 = vld [vmem:[%s2991_s6 + $0x98] sm:$0xff] }
 0x2e9   :  { %1251 = vmatprep.subr.mxu0 %v2199_v0  ;;  %1363 = vmatprep.subr.mxu1 %v2199_v0 }
 0x2ea   :  { %1252 = vmatpush1.msra.mxu0 %v1203_v45  ;;  %1364 = vmatpush1.msra.mxu1 %v1888_v33 }
 0x2eb   :  { %1253 = vmatprep.subr.mxu0 %v2199_v0  ;;  %1365 = vmatprep.subr.mxu1 %v2199_v0 }
 0x2ec   :  { %1254 = vmatpush1.msra.mxu0 %v1202_v46  ;;  %1366 = vmatpush1.msra.mxu1 %v1887_v47 }
 0x2ed   :  { %1255 = vmatprep.subr.mxu0 %v2199_v0  ;;  %1367 = vmatprep.subr.mxu1 %v2199_v0 }
 0x2ee   :  { %1256 = vmatpush1.msra.mxu0 %v1201_v28  ;;  %1368 = vmatpush1.msra.mxu1 %v1886_v55  ;;  %v1454_v28 = vld [vmem:[%s2991_s6 + $0x90] sm:$0xff]  ;;  %v1453_v55 = vld [vmem:[%s2991_s6 + $0x88] sm:$0xff] }
 0x2ef   :  { %1257 = vmatprep.subr.mxu0 %v2199_v0  ;;  %1369 = vmatprep.subr.mxu1 %v2199_v0 }
 0x2f0   :  { %1258 = vmatpush1.msra.mxu0 %v1200_v56  ;;  %1370 = vmatpush1.msra.mxu1 %v1885_v57  ;;  %v1452_v56 = vld [vmem:[%s2991_s6 + $0x80] sm:$0xff]  ;;  %v1451_v57 = vld [vmem:[%s2991_s6 + $0x78] sm:$0xff] }
 0x2f1   :  { %1259 = vmatprep.subr.mxu0 %v2199_v0  ;;  %1371 = vmatprep.subr.mxu1 %v2199_v0 }
 0x2f2   :  { %1260 = vmatpush1.msra.mxu0 %v1199_v27  ;;  %1372 = vmatpush1.msra.mxu1 %v1884_v54  ;;  %v1450_v27 = vld [vmem:[%s2991_s6 + $0x70] sm:$0xff]  ;;  %v1449_v54 = vld [vmem:[%s2991_s6 + $0x68] sm:$0xff] }
 0x2f3   :  { %1261 = vmatprep.subr.mxu0 %v2199_v0  ;;  %1373 = vmatprep.subr.mxu1 %v2199_v0 }
 0x2f4   :  { %1262 = vmatpush1.msra.mxu0 %v1198_v58  ;;  %1374 = vmatpush1.msra.mxu1 %v1883_v59  ;;  %v1448_v58 = vld [vmem:[%s2991_s6 + $0x60] sm:$0xff]  ;;  %v1447_v59 = vld [vmem:[%s2991_s6 + $0x58] sm:$0xff] }
 0x2f5   :  { %1263 = vmatprep.subr.mxu0 %v2199_v0  ;;  %1375 = vmatprep.subr.mxu1 %v2199_v0 }
 0x2f6   :  { %1264 = vmatpush1.msra.mxu0 %v1197_v26  ;;  %1376 = vmatpush1.msra.mxu1 %v1882_v53  ;;  %v1446_v26 = vld [vmem:[%s2991_s6 + $0x50] sm:$0xff]  ;;  %v1445_v53 = vld [vmem:[%s2991_s6 + $0x48] sm:$0xff] }
 0x2f7   :  { %1265 = vmatprep.subr.mxu0 %v2199_v0  ;;  %1377 = vmatprep.subr.mxu1 %v2199_v0 }
 0x2f8   :  { %1266 = vmatpush1.msra.mxu0 %v1196_v25  ;;  %1378 = vmatpush1.msra.mxu1 %v1881_v52  ;;  %v1444_v25 = vld [vmem:[%s2991_s6 + $0x40] sm:$0xff]  ;;  %v1443_v52 = vld [vmem:[%s2991_s6 + $0x38] sm:$0xff] }
 0x2f9   :  { %1279 = vmatprep.subr.mxu0 %v2199_v0  ;;  %1391 = vmatprep.subr.mxu1 %v2199_v0 }
 0x2fa   :  { %1280 = vmatpush2.msra.mxu0 %v1221_v60  ;;  %1392 = vmatpush2.msra.mxu1 %v1906_v5  ;;  %v1442_v60 = vld [vmem:[%s2991_s6 + $0x30] sm:$0xff]  ;;  %v1441_v5 = vld [vmem:[%s2991_s6 + $0x28] sm:$0xff] }
 0x2fb   :  { %1281 = vmatprep.subr.mxu0 %v2199_v0  ;;  %1393 = vmatprep.subr.mxu1 %v2199_v0 }
 0x2fc   :  { %1282 = vmatpush2.msra.mxu0 %v1220_v24  ;;  %1394 = vmatpush2.msra.mxu1 %v1905_v23  ;;  %v1440_v24 = vld [vmem:[%s2991_s6 + $0x20] sm:$0xff]  ;;  %v1439_v23 = vld [vmem:[%s2991_s6 + $0x18] sm:$0xff] }
 0x2fd   :  { %1283 = vmatprep.subr.mxu0 %v2199_v0  ;;  %1395 = vmatprep.subr.mxu1 %v2199_v0 }
 0x2fe   :  { %1284 = vmatpush2.msra.mxu0 %v1219_v50  ;;  %1396 = vmatpush2.msra.mxu1 %v1904_v22  ;;  %v1438_v50 = vld [vmem:[%s2991_s6 + $0x10] sm:$0xff]  ;;  %v1437_v22 = vld [vmem:[%s2991_s6 + $0x8] sm:$0xff] }
 0x2ff   :  { %1285 = vmatprep.subr.mxu0 %v2199_v0  ;;  %1397 = vmatprep.subr.mxu1 %v2199_v0 }
 0x300   :  { %1286 = vmatpush2.msra.mxu0 %v1218_v49  ;;  %1398 = vmatpush2.msra.mxu1 %v1903_v51  ;;  %v1436_v49 = vld [vmem:[%s2991_s6] sm:$0xff] }
 0x301   :  { %1287 = vmatprep.subr.mxu0 %v2199_v0  ;;  %1399 = vmatprep.subr.mxu1 %v2199_v0 }
 0x302   :  { %1288 = vmatpush2.msra.mxu0 %v1217_v21  ;;  %1400 = vmatpush2.msra.mxu1 %v1902_v48 }
 0x303   :  { %1289 = vmatprep.subr.mxu0 %v2199_v0  ;;  %1401 = vmatprep.subr.mxu1 %v2199_v0 }
 0x304   :  { %1290 = vmatpush2.msra.mxu0 %v1216_v1  ;;  %1402 = vmatpush2.msra.mxu1 %v1901_v2 }
 0x305   :  { %1291 = vmatprep.subr.mxu0 %v2199_v0  ;;  %1403 = vmatprep.subr.mxu1 %v2199_v0 }
 0x306   :  { %1292 = vmatpush2.msra.mxu0 %v1215_v63  ;;  %1404 = vmatpush2.msra.mxu1 %v1900_v3 }
 0x307   :  { %1293 = vmatprep.subr.mxu0 %v2199_v0  ;;  %1405 = vmatprep.subr.mxu1 %v2199_v0 }
 0x308   :  { %1294 = vmatpush2.msra.mxu0 %v1214_v4  ;;  %1406 = vmatpush2.msra.mxu1 %v1899_v62 }
 0x309   :  { %1295 = vmatprep.subr.mxu0 %v2199_v0  ;;  %1407 = vmatprep.subr.mxu1 %v2199_v0 }
 0x30a   :  { %1296 = vmatpush2.msra.mxu0 %v1213_v6  ;;  %1408 = vmatpush2.msra.mxu1 %v1898_v7 }
 0x30b   :  { %1297 = vmatprep.subr.mxu0 %v2199_v0  ;;  %1409 = vmatprep.subr.mxu1 %v2199_v0 }
 0x30c   :  { %1298 = vmatpush2.msra.mxu0 %v1212_v8  ;;  %1410 = vmatpush2.msra.mxu1 %v1897_v20 }
 0x30d   :  { %1694 = vmatprep.subr.mxu1 %v2199_v0  ;;  %1481 = vmatprep.subr.mxu0 %v1461_v61 }
 0x392   :  { %v1059_v9 = vpop.f32.mrf.mxu0  ;;  %v1165_v10 = vpop.f32.mrf.mxu1 }
 0x393   :  { %v1188_v14 = vmax.f32 %v1059_v9, %v1165_v10 }
 0x394   :  { %v1061_v11 = vpop.f32.mrf.mxu0  ;;  %v1167_v12 = vpop.f32.mrf.mxu1 }
 0x395   :  { %v1189_v13 = vmax.f32 %v1061_v11, %v1167_v12 }
 0x396   :  { %v1065_v15 = vpop.f32.mrf.mxu0  ;;  %v1171_v16 = vpop.f32.mrf.mxu1 }
 0x397   :  { %1877 = vmatprep.mubr.msk.f32.mxu0 %vm1222_vm5, %v1189_v13  ;;  %1907 = vmatprep.mubr.msk.f32.mxu1 %vm1222_vm5, %v1189_v13  ;;  %v1190_v36 = vmax.f32 %v1065_v15, %v1171_v16  ;;  %v1678_v15 = vld [vmem:[%s2994_s9 + $0x78] sm:$0xff]  ;;  %v1677_v16 = vld [vmem:[%s2994_s9 + $0x70] sm:$0xff] }
 0x398   :  { %v1067_v19 = vpop.f32.mrf.mxu0  ;;  %v1173_v34 = vpop.f32.mrf.mxu1  ;;  %1300 = vmatmul.mubr.f32.vlgmr.msra.gmra.mxu0 %v1188_v14  ;;  %1412 = vmatmul.mubr.f32.vlgmr.msra.gmra.mxu1 %v1188_v14 }
 0x399   :  { %v1191_v35 = vmax.f32 %v1067_v19, %v1173_v34  ;;  %1482 = vmatpush1.msra.mxu0 %v1460_v17  ;;  %1695 = vmatpush1.msra.mxu1 %v1678_v15  ;;  %v1676_v17 = vld [vmem:[%s2994_s9 + $0x68] sm:$0xff]  ;;  %v1674_v19 = vld [vmem:[%s2994_s9 + $0x58] sm:$0xff]  ;;  %v1673_v34 = vld [vmem:[%s2994_s9 + $0x50] sm:$0xff] }
 0x39a   :  { %v1071_v37 = vpop.f32.mrf.mxu0  ;;  %v1177_v38 = vpop.f32.mrf.mxu1  ;;  %1483 = vmatprep.subr.mxu0 %v1459_v18  ;;  %1696 = vmatprep.subr.mxu1 %v2199_v0  ;;  %v1675_v18 = vld [vmem:[%s2994_s9 + $0x60] sm:$0xff] }
 0x39b   :  { %1878 = vmatprep.mubr.msk.f32.mxu0 %vm1222_vm5, %v1191_v35  ;;  %1908 = vmatprep.mubr.msk.f32.mxu1 %vm1222_vm5, %v1191_v35  ;;  %v1192_v42 = vmax.f32 %v1071_v37, %v1177_v38  ;;  %v1672_v35 = vld [vmem:[%s2994_s9 + $0x48] sm:$0xff]  ;;  %v1670_v37 = vld [vmem:[%s2994_s9 + $0x38] sm:$0xff]  ;;  %v1669_v38 = vld [vmem:[%s2994_s9 + $0x30] sm:$0xff] }
 0x39c   :  { %v1073_v32 = vpop.f32.mrf.mxu0  ;;  %v1179_v40 = vpop.f32.mrf.mxu1  ;;  %1305 = vmatmul.mubr.f32.gmra.mxu0 %v1190_v36  ;;  %1417 = vmatmul.mubr.f32.gmra.mxu1 %v1190_v36  ;;  %v1671_v36 = vld [vmem:[%s2994_s9 + $0x40] sm:$0xff] }
 0x39d   :  { %v1193_v41 = vmax.f32 %v1073_v32, %v1179_v40  ;;  %1484 = vmatpush1.msra.mxu0 %v1458_v39  ;;  %1697 = vmatpush1.msra.mxu1 %v1677_v16  ;;  %v1668_v39 = vld [vmem:[%s2994_s9 + $0x28] sm:$0xff]  ;;  %v1666_v32 = vld [vmem:[%s2994_s9 + $0x18] sm:$0xff]  ;;  %v1665_v40 = vld [vmem:[%s2994_s9 + $0x10] sm:$0xff] }
 0x39e   :  { %v1077_v43 = vpop.f32.mrf.mxu0  ;;  %v1183_v30 = vpop.f32.mrf.mxu1  ;;  %1485 = vmatprep.subr.mxu0 %v1457_v31  ;;  %1698 = vmatprep.subr.mxu1 %v2199_v0  ;;  %v1667_v31 = vld [vmem:[%s2994_s9 + $0x20] sm:$0xff] }
 0x39f   :  { %1879 = vmatprep.mubr.msk.f32.mxu0 %vm1222_vm5, %v1193_v41  ;;  %1909 = vmatprep.mubr.msk.f32.mxu1 %vm1222_vm5, %v1193_v41  ;;  %v1194_v47 = vmax.f32 %v1077_v43, %v1183_v30  ;;  %v1664_v41 = vld [vmem:[%s2994_s9 + $0x8] sm:$0xff] }
 0x3a0   :  { %v1079_v45 = vpop.f32.mrf.mxu0  ;;  %v1185_v33 = vpop.f32.mrf.mxu1  ;;  %1310 = vmatmul.mubr.f32.gmra.mxu0 %v1192_v42  ;;  %1422 = vmatmul.mubr.f32.gmra.mxu1 %v1192_v42 }
 0x3a1   :  { %v1195_v46 = vmax.f32 %v1079_v45, %v1185_v33  ;;  %1486 = vmatpush1.msra.mxu0 %v1456_v44  ;;  %1699 = vmatpush1.msra.mxu1 %v1676_v17 }
 0x3a2   :  { %1487 = vmatprep.subr.mxu0 %v1455_v29  ;;  %1700 = vmatprep.subr.mxu1 %v2199_v0 }
 0x3a3   :  { %1880 = vmatprep.mubr.msk.f32.mxu0 %vm1222_vm5, %v1195_v46  ;;  %1910 = vmatprep.mubr.msk.f32.mxu1 %vm1222_vm5, %v1195_v46  ;;  %v1572_v46 = vld [vmem:[#allocation7 + $0x38] sm:$0x3] }
 0x3a4   :  { %1315 = vmatmul.mubr.f32.gmra.mxu0 %v1194_v47  ;;  %1427 = vmatmul.mubr.f32.gmra.mxu1 %v1194_v47  ;;  %v1571_v47 = vld [vmem:[#allocation7 + $0x30] sm:$0x3] }
 0x3a5   :  { %1488 = vmatpush1.msra.mxu0 %v1454_v28  ;;  %1539 = vmatprep.mubr.f32.mxu0 %v2199_v0  ;;  %v1570_v28 = vld [vmem:[#allocation7 + $0x28] sm:$0xff] }
 0x3a6   :  { %1489 = vmatprep.subr.mxu0 %v1453_v55  ;;  %1701 = vmatpush1.msra.mxu1 %v1675_v18 }
 0x3a7   :  { %1490 = vmatpush1.msra.mxu0 %v1452_v56  ;;  %1702 = vmatprep.subr.mxu1 %v2199_v0  ;;  %v1569_v56 = vld [vmem:[#allocation7 + $0x20] sm:$0xff] }
 0x3a8   :  { %1491 = vmatprep.subr.mxu0 %v1451_v57  ;;  %1703 = vmatpush1.msra.mxu1 %v1674_v19 }
 0x3a9   :  { %1492 = vmatpush1.msra.mxu0 %v1450_v27  ;;  %1704 = vmatprep.subr.mxu1 %v2199_v0  ;;  %v1568_v27 = vld [vmem:[#allocation7 + $0x18] sm:$0xff] }
 0x3aa   :  { %1493 = vmatprep.subr.mxu0 %v1449_v54  ;;  %1705 = vmatpush1.msra.mxu1 %v1673_v34 }
 0x3ab   :  { %1494 = vmatpush1.msra.mxu0 %v1448_v58  ;;  %1706 = vmatprep.subr.mxu1 %v2199_v0  ;;  %v1567_v58 = vld [vmem:[#allocation7 + $0x10] sm:$0xff] }
 0x3ac   :  { %1495 = vmatprep.subr.mxu0 %v1447_v59  ;;  %1707 = vmatpush1.msra.mxu1 %v1672_v35 }
 0x3ad   :  { %1496 = vmatpush1.msra.mxu0 %v1446_v26  ;;  %1708 = vmatprep.subr.mxu1 %v2199_v0  ;;  %v1566_v26 = vld [vmem:[#allocation7 + $0x8] sm:$0xff] }
 0x3ae   :  { %1497 = vmatprep.subr.mxu0 %v1445_v53  ;;  %1709 = vmatpush1.msra.mxu1 %v1671_v36 }
 0x3af   :  { %1498 = vmatpush1.msra.mxu0 %v1444_v25  ;;  %1710 = vmatprep.subr.mxu1 %v2199_v0  ;;  %v1565_v25 = vld [vmem:[#allocation7] sm:$0xff] }
 0x3b0   :  { %1499 = vmatprep.subr.mxu0 %v1443_v52  ;;  %1711 = vmatpush1.msra.mxu1 %v1670_v37 }
 0x3b1   :  { %1500 = vmatpush1.msra.mxu0 %v1442_v60  ;;  %1712 = vmatprep.subr.mxu1 %v2199_v0 }
 0x3b2   :  { %1501 = vmatprep.subr.mxu0 %v1441_v5  ;;  %1713 = vmatpush1.msra.mxu1 %v1669_v38 }
 0x3b3   :  { %1502 = vmatpush1.msra.mxu0 %v1440_v24  ;;  %1714 = vmatprep.subr.mxu1 %v2199_v0 }
 0x3b4   :  { %1503 = vmatprep.subr.mxu0 %v1439_v23  ;;  %1715 = vmatpush1.msra.mxu1 %v1668_v39  ;;  %v1564_v23 = vld [vmem:[%s2993_s8] sm:$0x3]  ;;  %s2201_s8 = smov [#allocation10]  }
 0x3b5   :  { %1504 = vmatpush1.msra.mxu0 %v1438_v50  ;;  %1716 = vmatprep.subr.mxu1 %v2199_v0  ;;  %v1663_v50 = vld [vmem:[%s2994_s9] sm:$0xff] }
 0x3b6   :  { %1505 = vmatprep.subr.mxu0 %v1437_v22  ;;  %1717 = vmatpush1.msra.mxu1 %v1667_v31  ;;  %v1679_v22 = vld [vmem:[%s2994_s9 + $0x80] sm:$0x3]  ;;  %s1786_s9 = sshll.u32 %s2201_s8, 4  ;;  %s1787_s9 = int_to_ptr.vmem [resolvable:$true] %s1786_s9 }
 0x3b7   :  { %1506 = vmatpush1.msra.mxu0 %v1436_v49  ;;  %1718 = vmatprep.subr.mxu1 %v2199_v0  ;;  %s2163_s20 = scalar_lea.vmem %s1787_s9, 32  ;;  %p2168_p7 = scmp.lt.s32.totalorder %s1787_s9, %s1787_s9 }
 0x3b8   :  { %1719 = vmatpush1.msra.mxu1 %v1666_v32  ;;  %p2164_p6 = scmp.ne.s32.totalorder %s1787_s9, %s2163_s20  ;;  %p2169_p8 = scmp.lt.s32.totalorder %s2163_s20, %s2163_s20 }
 0x3b9   :  { %1720 = vmatprep.subr.mxu1 %v2199_v0 }
 0x3ba   :  { %1721 = vmatpush1.msra.mxu1 %v1665_v40  ;;  %p2170_p9 = por %p2169_p8, %p2168_p7 }
 0x3bb   :  { %1722 = vmatprep.subr.mxu1 %v2199_v0 }
 0x3bc   :  { %1723 = vmatpush1.msra.mxu1 %v1664_v41  ;;  %p2171_p10 = pnand %p2170_p9, %p2164_p6 }
 0x3bd   :  { %1724 = vmatprep.subr.mxu1 %v2199_v0 }
 0x3be   :  { %1725 = vmatpush1.msra.mxu1 %v1663_v50 }
 0x3bf   :  { %1756 = vmatprep.subr.mxu1 %v2199_v0 }
 0x3c0   :  { %1919 = vmatpush2.msk.msra.mxu1 %vm1585_vm7, %v1679_v22 }
 0x458   :  { %v1301_v51 = vpop.f32.mrf.mxu0  ;;  %v1413_v21 = vpop.f32.mrf.mxu1 }
 0x459   :  { %v1432_v48 = vmax.f32 %v1301_v51, %v1413_v21  ;;  %v1918_v21 = vld [vmem:[#allocation8] ss:$0 sm:$0xff] }
 0x45a   :  { %v1303_v1 = vpop.f32.mrf.mxu0  ;;  %v1415_v2 = vpop.f32.mrf.mxu1 }
 0x45b   :  { %1911 = vmatmul.mubr.msk.f32.vlgmr.msra.gmra.mxu0 %vm1462_vm6, %v1432_v48 }
 0x45c   :  { %v1306_v63 = vpop.f32.mrf.mxu0  ;;  %v1418_v3 = vpop.f32.mrf.mxu1  ;;  %1545 = vmatprep.mubr.f32.mxu0 %v2199_v0 }
 0x45d   :  { %v1433_v4 = vmax.f32 %v1306_v63, %v1418_v3 }
 0x45e   :  { %v1308_v62 = vpop.f32.mrf.mxu0  ;;  %v1420_v6 = vpop.f32.mrf.mxu1 }
 0x45f   :  { %1912 = vmatmul.mubr.msk.f32.gmra.mxu0 %vm1462_vm6, %v1433_v4 }
 0x460   :  { %v1311_v7 = vpop.f32.mrf.mxu0  ;;  %v1423_v8 = vpop.f32.mrf.mxu1  ;;  %1551 = vmatprep.mubr.f32.mxu0 %v2199_v0 }
 0x461   :  { %v1434_v20 = vmax.f32 %v1311_v7, %v1423_v8 }
 0x462   :  { %v1313_v61 = vpop.f32.mrf.mxu0  ;;  %v1425_v9 = vpop.f32.mrf.mxu1 }
 0x463   :  { %1913 = vmatmul.mubr.msk.f32.gmra.mxu0 %vm1462_vm6, %v1434_v20 }
 0x464   :  { %v1316_v10 = vpop.f32.mrf.mxu0  ;;  %v1428_v11 = vpop.f32.mrf.mxu1  ;;  %1557 = vmatprep.mubr.f32.mxu0 %v2199_v0 }
 0x465   :  { %v1435_v12 = vmax.f32 %v1316_v10, %v1428_v11 }
 0x466   :  { %v1318_v13 = vpop.f32.mrf.mxu0  ;;  %v1430_v14 = vpop.f32.mrf.mxu1 }
 0x467   :  { %1914 = vmatmul.mubr.msk.f32.gmra.mxu0 %vm1462_vm6, %v1435_v12 }
 0x468   :  { %1656 = vmatprep.mubr.f32.mxu0 %v2199_v0 }
 0x51b   :  { %v1541_v42 = vpop.f32.mrf.mxu0 }
 0x51c   :  { %v1573_v24 = vmul.f32 %v1565_v25, %v1541_v42 }
 0x51d   :  { %v1543_v43 = vpop.f32.mrf.mxu0 }
 0x51e   :  { %v1574_v5 = vmul.f32 %v1566_v26, %v1543_v43 }
 0x51f   :  { %v1547_v30 = vpop.f32.mrf.mxu0 }
 0x520   :  { %v1575_v60 = vmul.f32 %v1567_v58, %v1547_v30 }
 0x521   :  { %v1549_v44 = vpop.f32.mrf.mxu0 }
 0x522   :  { %v1576_v52 = vmul.f32 %v1568_v27, %v1549_v44 }
 0x523   :  { %v1553_v29 = vpop.f32.mrf.mxu0 }
 0x524   :  { %v1577_v53 = vmul.f32 %v1569_v56, %v1553_v29 }
 0x525   :  { %v1555_v45 = vpop.f32.mrf.mxu0 }
 0x526   :  { %v1578_v59 = vmul.f32 %v1570_v28, %v1555_v45 }
 0x527   :  { %v1559_v33 = vpop.f32.mrf.mxu0 }
 0x528   :  { %v1579_v54 = vmul.f32 %v1571_v47, %v1559_v33 }
 0x529   :  { %v1561_v55 = vpop.f32.mrf.mxu0 }
 0x52a   :  { %v1580_v57 = vmul.f32 %v1572_v46, %v1561_v55 }
 0x52c   :  { %1915 = vmatprep.subr.msk.mxu0 %vm1585_vm7, %v1580_v57 }
 0x52d   :  { %1916 = vmatpush1.msk.msra.mxu0 %vm1585_vm7, %v1579_v54 }
 0x52e   :  { %1618 = vmatprep.subr.mxu0 %v1578_v59 }
 0x52f   :  { %1619 = vmatpush1.msra.mxu0 %v1577_v53 }
 0x530   :  { %1620 = vmatprep.subr.mxu0 %v1576_v52 }
 0x531   :  { %1621 = vmatpush1.msra.mxu0 %v1575_v60 }
 0x532   :  { %1622 = vmatprep.subr.mxu0 %v1574_v5 }
 0x533   :  { %1623 = vmatpush1.msra.mxu0 %v1573_v24 }
 0x534   :  { %1917 = vmatmul.mubr.msk.f32.vlgmr.msra.gmra.mxu0 %vm1581_vm8, %v1564_v23 }
 0x5f4   :  { %v1658_v49 = vpop.f32.mrf.mxu0 }
 0x5f6   :  { %v1660_v51 = vpop.f32.mrf.mxu0 }
 0x5f7   :  { %1920 = vmatprep.mubr.msk.f32.mxu1 %vm1687_vm9, %v1660_v51 }
 0x5f8   :  { %1759 = vmatmul.mubr.f32.vlgmr.msra.gmra.mxu1 %v1658_v49 }
 0x6b8   :  { %v1760_v48 = vpop.f32.mrf.mxu1 }
 0x6b9   :  { %v1761_v1 = vadd.f32 %v1918_v21, %v1760_v48 }
 0x6ba   :  { %v1762_v2 = vpop.f32.mrf.mxu1 }
 0x6bb   :  { %v1764_v63 = vmax.f32 %v1761_v1, 0.0 }
 0x6bd   :  { %v1766_v3 = vsel %vm1765_vm10, %v1764_v63, -inf }
 0x6be   :  { %1767 = vmax.xlane.f32.xlu0 %v1766_v3 }
 0x747   :  { %v1768_v0 = vpop.xlane.xlu0 %1767 }
 0x748   :  { %v1769_v4 = vsub.f32 %v1764_v63, %v1768_v0 }
 0x74a   :  { %v1770_v62 = vmul.f32 1.442695, %v1769_v4 }
 0x74c   :  { %2079 = vpow2.f32 %v1770_v62 }
 0x759   :  { %v2080_v6 = vpop.eup %2079 }
 0x75a   :  { %v1772_v7 = vsel %vm1765_vm10, %v2080_v6, 0.0 }
 0x75b   :  { %1773 = vadd.xlane.f32.xlu0 %v1772_v7 }
 0x7e4   :  { %v1774_v8 = vpop.xlane.xlu0 %1773 }
 0x7e5   :  { %2081 = vlog2.f32 %v1774_v8 }
 0x7f2   :  { %v2082_v20 = vpop.eup %2081 }
 0x7f3   :  { %v1776_v61 = vmul.f32 0.6931472, %v2082_v20 }
 0x7f5   :  { %v1777_v9 = vadd.f32 %v1776_v61, %v1768_v0 }
 0x7f7   :  { %v1778_v10 = vsub.f32 %v1764_v63, %v1777_v9 }
 0x7f9   :  { %1779 = vst.msk [vmem:[#allocation10] sm:$0x3] %vm1765_vm10, %v1778_v10 }
 0x7fa   :  { %2174 = shalt.err (!%p2171_p10)
}
 0x7fb   :  { %1789 = dma.vmem_to_hbm [thread:$0]  %s1787_s9, 32, %s2996_s11, [#allocation4]  }
 0x7fc   :  { %2189 = dma.done.wait [#allocation4], 32  }
 0x7fd   :  { %2190 = vsyncadd [#allocation4], 4294967264 }
 0x7fe   :  { %1793 = vsyncpa [#allocation3], 1 }
 0x7ff   :  { %1794 = vsyncpa [#allocation6], 1 }
 0x800   :  { %1795 = vsyncpa [#allocation9], 1 }
 0x801   :  { %1796 = vsyncpa [#allocation4], 1 }

</bundles_post_ra>
